<compile_context>
chip_gen: v5e
topology: v5e:2x2
jax: 0.10.0
libtpu: 0.0.40
codegen_flags: <defaults>
</compile_context>

<pallas_src>
import math
import jax
import jax.numpy as jnp
from jax.experimental import pallas as pl
from jax.experimental.pallas import tpu as pltpu

# ----- small demo configuration (consistent with the module) -----
B = 2            # batch
T = 8            # sequence length  (<= block_size)
C = 32           # n_embd
N_HEAD = 4
HEAD_DIM = C // N_HEAD
N_LAYER = 2
BLOCK_SIZE = 16  # max_len for positional encoding
MLP_HID = 4 * C
LN_EPS = 1e-5


def _layernorm(x, g, b):
    mu = jnp.mean(x, axis=-1, keepdims=True)
    var = jnp.mean(jnp.square(x - mu), axis=-1, keepdims=True)
    return (x - mu) * jax.lax.rsqrt(var + LN_EPS) * g + b


# ---------------- fused Pallas kernel ----------------

def stack_fused_kernel(x_ref, pe_ref,
                       ln1g_ref, ln1b_ref, wqkv_ref, bqkv_ref,
                       wproj_ref, bproj_ref, ln2g_ref, ln2b_ref,
                       w1_ref, b1_ref, w2_ref, b2_ref,
                       lnfg_ref, lnfb_ref, whead_ref, o_ref):
    """Entire Stack.forward for all batch elements in one program.

    x_ref : (B*T, C) activations, batch flattened into rows.
    pe_ref: (B*T, C) positional encoding already tiled over batch (wrapper).
    Per-layer weights are stacked on a leading N_LAYER axis.
    """
    # positional encoding only before layer 0 (pos_all=False); dropout = identity.
    x = x_ref[...] + pe_ref[...]                                # (B*T, C)

    scale = 1.0 / math.sqrt(HEAD_DIM)

    for l in range(N_LAYER):                                    # static unroll over layers
        # hoist per-layer parameter loads (done once per layer)
        ln1g, ln1b = ln1g_ref[l], ln1b_ref[l]
        wqkv, bqkv = wqkv_ref[l], bqkv_ref[l]
        wproj, bproj = wproj_ref[l], bproj_ref[l]
        ln2g, ln2b = ln2g_ref[l], ln2b_ref[l]
        w1, b1 = w1_ref[l], b1_ref[l]
        w2, b2 = w2_ref[l], b2_ref[l]

        # --- multi-head self attention branch (pre-LN, non-causal) ---
        h = _layernorm(x, ln1g, ln1b)
        qkv = jnp.dot(h, wqkv, preferred_element_type=jnp.float32) + bqkv   # (B*T, 3C)
        # split q/k/v, fold in the attention scale once, restore the batch axis
        q = (qkv[:, :C] * scale).reshape(B, T, C)
        k = qkv[:, C:2 * C].reshape(B, T, C)
        v = qkv[:, 2 * C:].reshape(B, T, C)

        heads = []
        for hh in range(N_HEAD):                                # static loop over heads
            sl = slice(hh * HEAD_DIM, (hh + 1) * HEAD_DIM)
            qh, kh, vh = q[..., sl], k[..., sl], v[..., sl]     # (B, T, hd)
            att = jnp.einsum('bqd,bkd->bqk', qh, kh,
                             preferred_element_type=jnp.float32)            # (B, T, T)
            att = att - jnp.max(att, axis=-1, keepdims=True)
            p = jnp.exp(att)
            p = p * pl.reciprocal(jnp.sum(p, axis=-1, keepdims=True), approx=True)
            heads.append(jnp.einsum('bqk,bkd->bqd', p, vh,
                                    preferred_element_type=jnp.float32))    # (B, T, hd)
        y = jnp.concatenate(heads, axis=-1).reshape(B * T, C)   # (B*T, C)
        y = jnp.dot(y, wproj, preferred_element_type=jnp.float32) + bproj
        x = x + y                                               # residual 1 (in_residual=True)

        # --- MLP branch ---
        h2 = _layernorm(x, ln2g, ln2b)
        m = jnp.dot(h2, w1, preferred_element_type=jnp.float32) + b1
        m = jax.nn.gelu(m)                                      # tanh-approx GELU (see TODO above)
        m = jnp.dot(m, w2, preferred_element_type=jnp.float32) + b2
        x = x + m                                               # residual 2 (out_residual=True)

    # --- final LayerNorm + bias-free head ---
    hf = _layernorm(x, lnfg_ref[...], lnfb_ref[...])
    o_ref[...] = jnp.dot(hf, whead_ref[...], preferred_element_type=jnp.float32)


# ---------------- wrapper ----------------

def _full_spec(shape):
    nd = len(shape)
    return pl.BlockSpec(shape, lambda i, _nd=nd: (0,) * _nd)


PARAM_ORDER = ["ln1_g", "ln1_b", "wqkv", "bqkv", "wproj", "bproj",
               "ln2_g", "ln2_b", "w1", "b1", "w2", "b2"]


@jax.jit
def stack_forward(x, layers, final, pe):
    # layout plumbing kept in the wrapper (outside the kernel):
    #   * flatten batch into rows,
    #   * slice + tile the positional encoding over batch.
    x2 = x.reshape(B * T, C)
    pe_tiled = jnp.tile(pe[0, :T], (B, 1))                      # (B*T, C)

    args = ([x2, pe_tiled]
            + [layers[name] for name in PARAM_ORDER]
            + [final["lnf_g"], final["lnf_b"], final["whead"]])

    out = pl.pallas_call(
        stack_fused_kernel,
        out_shape=jax.ShapeDtypeStruct((B * T, C), jnp.float32),
        grid=(1,),
        in_specs=[_full_spec(a.shape) for a in args],
        out_specs=_full_spec((B * T, C)),
        compiler_params=pltpu.CompilerParams(
            # single program; don't shard this tiny problem across cores.
            dimension_semantics=("arbitrary",),
        ),
    )(*args)
    return out.reshape(B, T, C)


# ---------------- pure-JAX reference (same math, XLA ops) ----------------

def reference_forward(x, layers, final, pe):
    x = x + pe[0, :T][None]                                     # (B, T, C)
    scale = 1.0 / math.sqrt(HEAD_DIM)
    for l in range(N_LAYER):
        h = _layernorm(x, layers["ln1_g"][l], layers["ln1_b"][l])
        qkv = h @ layers["wqkv"][l] + layers["bqkv"][l]
        q, k, v = qkv[..., :C], qkv[..., C:2 * C], qkv[..., 2 * C:]
        q = q.reshape(B, T, N_HEAD, HEAD_DIM).transpose(0, 2, 1, 3)
        k = k.reshape(B, T, N_HEAD, HEAD_DIM).transpose(0, 2, 1, 3)
        v = v.reshape(B, T, N_HEAD, HEAD_DIM).transpose(0, 2, 1, 3)
        att = jnp.einsum('bhqd,bhkd->bhqk', q, k) * scale
        p = jax.nn.softmax(att, axis=-1)
        y = jnp.einsum('bhqk,bhkd->bhqd', p, v).transpose(0, 2, 1, 3).reshape(B, T, C)
        y = y @ layers["wproj"][l] + layers["bproj"][l]
        x = x + y
        h2 = _layernorm(x, layers["ln2_g"][l], layers["ln2_b"][l])
        m = jax.nn.gelu(h2 @ layers["w1"][l] + layers["b1"][l])
        m = m @ layers["w2"][l] + layers["b2"][l]
        x = x + m
    x = _layernorm(x, final["lnf_g"], final["lnf_b"])
    return x @ final["whead"]


# ---------------- parameters (deterministic, synthetic) ----------------

def make_sine_pe():
    position = jnp.arange(BLOCK_SIZE, dtype=jnp.float32)[:, None]
    div_term = jnp.exp(jnp.arange(0, C, 2, dtype=jnp.float32)
                       * (-math.log(10000.0) / C))
    pe = jnp.zeros((BLOCK_SIZE, C), jnp.float32)
    pe = pe.at[:, 0::2].set(jnp.sin(position * div_term))
    pe = pe.at[:, 1::2].set(jnp.cos(position * div_term))
    return pe[None]                                  # (1, max_len, C)


def make_params(key):
    def nrm(k, shape):
        return 0.02 * jax.random.normal(k, shape, jnp.float32)   # std=0.02 like _init_weights

    per_layer_keys = [jax.random.split(jax.random.fold_in(key, i), 4)
                      for i in range(N_LAYER)]
    # weights stacked on a leading layer axis so the fused kernel indexes them.
    layers = dict(
        ln1_g=jnp.ones((N_LAYER, 1, C), jnp.float32),
        ln1_b=jnp.zeros((N_LAYER, 1, C), jnp.float32),
        wqkv=jnp.stack([nrm(per_layer_keys[i][0], (C, 3 * C)) for i in range(N_LAYER)]),
        bqkv=jnp.zeros((N_LAYER, 1, 3 * C), jnp.float32),
        wproj=jnp.stack([nrm(per_layer_keys[i][1], (C, C)) for i in range(N_LAYER)]),
        bproj=jnp.zeros((N_LAYER, 1, C), jnp.float32),
        ln2_g=jnp.ones((N_LAYER, 1, C), jnp.float32),
        ln2_b=jnp.zeros((N_LAYER, 1, C), jnp.float32),
        w1=jnp.stack([nrm(per_layer_keys[i][2], (C, MLP_HID)) for i in range(N_LAYER)]),
        b1=jnp.zeros((N_LAYER, 1, MLP_HID), jnp.float32),
        w2=jnp.stack([nrm(per_layer_keys[i][3], (MLP_HID, C)) for i in range(N_LAYER)]),
        b2=jnp.zeros((N_LAYER, 1, C), jnp.float32),
    )
    kh = jax.random.fold_in(key, 1000)
    final = dict(
        lnf_g=jnp.ones((1, C), jnp.float32),
        lnf_b=jnp.zeros((1, C), jnp.float32),
        whead=nrm(kh, (C, C)),
    )
    return layers, final, make_sine_pe()


if __name__ == "__main__":
    key = jax.random.PRNGKey(0)
    kx, kp = jax.random.split(key)
    x = jax.random.normal(kx, (B, T, C), jnp.float32)
    layers, final, pe = make_params(kp)

    logits = stack_forward(x, layers, final, pe)
    jax.block_until_ready(logits)
    assert logits.shape == (B, T, C) and logits.dtype == jnp.float32

    ref = reference_forward(x, layers, final, pe)
    jax.block_until_ready(ref)
    # loose tolerance: approx-reciprocal softmax + MXU f32 rounding vs XLA ref.
    assert bool(jnp.allclose(logits, ref, rtol=2e-2, atol=2e-2)), (
        float(jnp.max(jnp.abs(logits - ref))))

    print("KERNEL_OK")
</pallas_src>

<mosaic_0001>
module attributes {stable_mosaic.version = 11 : i64} {
  func.func @stack_fused_kernel(%arg0: i32, %arg1: memref<16x32xf32, #tpu.memory_space<vmem>>, %arg2: memref<16x32xf32, #tpu.memory_space<vmem>>, %arg3: memref<2x1x32xf32, #tpu.memory_space<vmem>>, %arg4: memref<2x1x32xf32, #tpu.memory_space<vmem>>, %arg5: memref<2x32x96xf32, #tpu.memory_space<vmem>>, %arg6: memref<2x1x96xf32, #tpu.memory_space<vmem>>, %arg7: memref<2x32x32xf32, #tpu.memory_space<vmem>>, %arg8: memref<2x1x32xf32, #tpu.memory_space<vmem>>, %arg9: memref<2x1x32xf32, #tpu.memory_space<vmem>>, %arg10: memref<2x1x32xf32, #tpu.memory_space<vmem>>, %arg11: memref<2x32x128xf32, #tpu.memory_space<vmem>>, %arg12: memref<2x1x128xf32, #tpu.memory_space<vmem>>, %arg13: memref<2x128x32xf32, #tpu.memory_space<vmem>>, %arg14: memref<2x1x32xf32, #tpu.memory_space<vmem>>, %arg15: memref<1x32xf32, #tpu.memory_space<vmem>>, %arg16: memref<1x32xf32, #tpu.memory_space<vmem>>, %arg17: memref<32x32xf32, #tpu.memory_space<vmem>>, %arg18: memref<16x32xf32, #tpu.memory_space<vmem>>) attributes {dimension_semantics = [#tpu.dimension_semantics<arbitrary>], iteration_bounds = array<i64: 1>, scalar_prefetch = 0 : i64, scratch_operands = 0 : i64, tpu.core_type = #tpu.core_type<tc>, window_params = [{pipeline_mode = #tpu.pipeline_mode<synchronous>, transform_indices = @transform_0, window_bounds = array<i64: 16, 32>}, {pipeline_mode = #tpu.pipeline_mode<synchronous>, transform_indices = @transform_1, window_bounds = array<i64: 16, 32>}, {pipeline_mode = #tpu.pipeline_mode<synchronous>, transform_indices = @transform_2, window_bounds = array<i64: 2, 1, 32>}, {pipeline_mode = #tpu.pipeline_mode<synchronous>, transform_indices = @transform_3, window_bounds = array<i64: 2, 1, 32>}, {pipeline_mode = #tpu.pipeline_mode<synchronous>, transform_indices = @transform_4, window_bounds = array<i64: 2, 32, 96>}, {pipeline_mode = #tpu.pipeline_mode<synchronous>, transform_indices = @transform_5, window_bounds = array<i64: 2, 1, 96>}, {pipeline_mode = #tpu.pipeline_mode<synchronous>, transform_indices = @transform_6, window_bounds = array<i64: 2, 32, 32>}, {pipeline_mode = #tpu.pipeline_mode<synchronous>, transform_indices = @transform_7, window_bounds = array<i64: 2, 1, 32>}, {pipeline_mode = #tpu.pipeline_mode<synchronous>, transform_indices = @transform_8, window_bounds = array<i64: 2, 1, 32>}, {pipeline_mode = #tpu.pipeline_mode<synchronous>, transform_indices = @transform_9, window_bounds = array<i64: 2, 1, 32>}, {pipeline_mode = #tpu.pipeline_mode<synchronous>, transform_indices = @transform_10, window_bounds = array<i64: 2, 32, 128>}, {pipeline_mode = #tpu.pipeline_mode<synchronous>, transform_indices = @transform_11, window_bounds = array<i64: 2, 1, 128>}, {pipeline_mode = #tpu.pipeline_mode<synchronous>, transform_indices = @transform_12, window_bounds = array<i64: 2, 128, 32>}, {pipeline_mode = #tpu.pipeline_mode<synchronous>, transform_indices = @transform_13, window_bounds = array<i64: 2, 1, 32>}, {pipeline_mode = #tpu.pipeline_mode<synchronous>, transform_indices = @transform_14, window_bounds = array<i64: 1, 32>}, {pipeline_mode = #tpu.pipeline_mode<synchronous>, transform_indices = @transform_15, window_bounds = array<i64: 1, 32>}, {pipeline_mode = #tpu.pipeline_mode<synchronous>, transform_indices = @transform_16, window_bounds = array<i64: 32, 32>}, {pipeline_mode = #tpu.pipeline_mode<synchronous>, transform_indices = @transform_17, window_bounds = array<i64: 16, 32>}]} {
    %c0 = arith.constant 0 : index
    %c0_0 = arith.constant 0 : index
    %0 = vector.load %arg1[%c0, %c0_0] : memref<16x32xf32, #tpu.memory_space<vmem>>, vector<16x32xf32>
    %c0_1 = arith.constant 0 : index
    %c0_2 = arith.constant 0 : index
    %1 = vector.load %arg2[%c0_1, %c0_2] : memref<16x32xf32, #tpu.memory_space<vmem>>, vector<16x32xf32>
    %2 = arith.addf %0, %1 : vector<16x32xf32>
    %c0_3 = arith.constant 0 : index
    %c0_4 = arith.constant 0 : index
    %c0_5 = arith.constant 0 : index
    %3 = vector.load %arg3[%c0_3, %c0_4, %c0_5] : memref<2x1x32xf32, #tpu.memory_space<vmem>>, vector<1x1x32xf32>
    %4 = vector.shape_cast %3 : vector<1x1x32xf32> to vector<1x32xf32>
    %c0_6 = arith.constant 0 : index
    %c0_7 = arith.constant 0 : index
    %c0_8 = arith.constant 0 : index
    %5 = vector.load %arg4[%c0_6, %c0_7, %c0_8] : memref<2x1x32xf32, #tpu.memory_space<vmem>>, vector<1x1x32xf32>
    %6 = vector.shape_cast %5 : vector<1x1x32xf32> to vector<1x32xf32>
    %c0_9 = arith.constant 0 : index
    %c0_10 = arith.constant 0 : index
    %c0_11 = arith.constant 0 : index
    %7 = vector.load %arg5[%c0_9, %c0_10, %c0_11] : memref<2x32x96xf32, #tpu.memory_space<vmem>>, vector<1x32x96xf32>
    %8 = vector.shape_cast %7 : vector<1x32x96xf32> to vector<32x96xf32>
    %c0_12 = arith.constant 0 : index
    %c0_13 = arith.constant 0 : index
    %c0_14 = arith.constant 0 : index
    %9 = vector.load %arg6[%c0_12, %c0_13, %c0_14] : memref<2x1x96xf32, #tpu.memory_space<vmem>>, vector<1x1x96xf32>
    %10 = vector.shape_cast %9 : vector<1x1x96xf32> to vector<1x96xf32>
    %c0_15 = arith.constant 0 : index
    %c0_16 = arith.constant 0 : index
    %c0_17 = arith.constant 0 : index
    %11 = vector.load %arg7[%c0_15, %c0_16, %c0_17] : memref<2x32x32xf32, #tpu.memory_space<vmem>>, vector<1x32x32xf32>
    %12 = vector.shape_cast %11 : vector<1x32x32xf32> to vector<32x32xf32>
    %c0_18 = arith.constant 0 : index
    %c0_19 = arith.constant 0 : index
    %c0_20 = arith.constant 0 : index
    %13 = vector.load %arg8[%c0_18, %c0_19, %c0_20] : memref<2x1x32xf32, #tpu.memory_space<vmem>>, vector<1x1x32xf32>
    %14 = vector.shape_cast %13 : vector<1x1x32xf32> to vector<1x32xf32>
    %c0_21 = arith.constant 0 : index
    %c0_22 = arith.constant 0 : index
    %c0_23 = arith.constant 0 : index
    %15 = vector.load %arg9[%c0_21, %c0_22, %c0_23] : memref<2x1x32xf32, #tpu.memory_space<vmem>>, vector<1x1x32xf32>
    %16 = vector.shape_cast %15 : vector<1x1x32xf32> to vector<1x32xf32>
    %c0_24 = arith.constant 0 : index
    %c0_25 = arith.constant 0 : index
    %c0_26 = arith.constant 0 : index
    %17 = vector.load %arg10[%c0_24, %c0_25, %c0_26] : memref<2x1x32xf32, #tpu.memory_space<vmem>>, vector<1x1x32xf32>
    %18 = vector.shape_cast %17 : vector<1x1x32xf32> to vector<1x32xf32>
    %c0_27 = arith.constant 0 : index
    %c0_28 = arith.constant 0 : index
    %c0_29 = arith.constant 0 : index
    %19 = vector.load %arg11[%c0_27, %c0_28, %c0_29] : memref<2x32x128xf32, #tpu.memory_space<vmem>>, vector<1x32x128xf32>
    %20 = vector.shape_cast %19 : vector<1x32x128xf32> to vector<32x128xf32>
    %c0_30 = arith.constant 0 : index
    %c0_31 = arith.constant 0 : index
    %c0_32 = arith.constant 0 : index
    %21 = vector.load %arg12[%c0_30, %c0_31, %c0_32] : memref<2x1x128xf32, #tpu.memory_space<vmem>>, vector<1x1x128xf32>
    %22 = vector.shape_cast %21 : vector<1x1x128xf32> to vector<1x128xf32>
    %c0_33 = arith.constant 0 : index
    %c0_34 = arith.constant 0 : index
    %c0_35 = arith.constant 0 : index
    %23 = vector.load %arg13[%c0_33, %c0_34, %c0_35] : memref<2x128x32xf32, #tpu.memory_space<vmem>>, vector<1x128x32xf32>
    %24 = vector.shape_cast %23 : vector<1x128x32xf32> to vector<128x32xf32>
    %c0_36 = arith.constant 0 : index
    %c0_37 = arith.constant 0 : index
    %c0_38 = arith.constant 0 : index
    %25 = vector.load %arg14[%c0_36, %c0_37, %c0_38] : memref<2x1x32xf32, #tpu.memory_space<vmem>>, vector<1x1x32xf32>
    %26 = vector.shape_cast %25 : vector<1x1x32xf32> to vector<1x32xf32>
    %cst = arith.constant dense<0.000000e+00> : vector<16xf32>
    %27 = vector.multi_reduction <add>, %2, %cst [1] : vector<16x32xf32> to vector<16xf32>
    %28 = vector.shape_cast %27 : vector<16xf32> to vector<16x1xf32>
    %cst_39 = arith.constant 3.200000e+01 : f32
    %29 = vector.broadcast %cst_39 : f32 to vector<16x1xf32>
    %30 = arith.divf %28, %29 : vector<16x1xf32>
    %31 = vector.broadcast %30 : vector<16x1xf32> to vector<16x32xf32>
    %32 = arith.subf %2, %31 : vector<16x32xf32>
    %33 = arith.mulf %32, %32 : vector<16x32xf32>
    %cst_40 = arith.constant dense<0.000000e+00> : vector<16xf32>
    %34 = vector.multi_reduction <add>, %33, %cst_40 [1] : vector<16x32xf32> to vector<16xf32>
    %35 = vector.shape_cast %34 : vector<16xf32> to vector<16x1xf32>
    %cst_41 = arith.constant 3.200000e+01 : f32
    %36 = vector.broadcast %cst_41 : f32 to vector<16x1xf32>
    %37 = arith.divf %35, %36 : vector<16x1xf32>
    %38 = vector.broadcast %30 : vector<16x1xf32> to vector<16x32xf32>
    %39 = arith.subf %2, %38 : vector<16x32xf32>
    %cst_42 = arith.constant 9.99999974E-6 : f32
    %40 = vector.broadcast %cst_42 : f32 to vector<16x1xf32>
    %41 = arith.addf %37, %40 : vector<16x1xf32>
    %42 = math.rsqrt %41 : vector<16x1xf32>
    %43 = vector.broadcast %42 : vector<16x1xf32> to vector<16x32xf32>
    %44 = arith.mulf %39, %43 : vector<16x32xf32>
    %45 = vector.broadcast %4 : vector<1x32xf32> to vector<16x32xf32>
    %46 = arith.mulf %44, %45 : vector<16x32xf32>
    %47 = vector.broadcast %6 : vector<1x32xf32> to vector<16x32xf32>
    %48 = arith.addf %46, %47 : vector<16x32xf32>
    %cst_43 = arith.constant dense<0.000000e+00> : vector<16x96xf32>
    %49 = tpu.matmul %48, %8, %cst_43 {dimension_numbers = #tpu.dot_dimension_numbers<[1], [0], [0], [1], [0, 0, 1, 1], [], []>} : vector<16x32xf32>, vector<32x96xf32>, vector<16x96xf32> -> vector<16x96xf32>
    %50 = vector.broadcast %10 : vector<1x96xf32> to vector<16x96xf32>
    %51 = arith.addf %49, %50 : vector<16x96xf32>
    %52 = vector.extract_strided_slice %51 {offsets = [0, 0], sizes = [16, 32], strides = [1, 1]} : vector<16x96xf32> to vector<16x32xf32>
    %cst_44 = arith.constant 0.353553385 : f32
    %53 = vector.broadcast %cst_44 : f32 to vector<16x32xf32>
    %54 = arith.mulf %52, %53 : vector<16x32xf32>
    %55 = vector.shape_cast %54 : vector<16x32xf32> to vector<2x8x32xf32>
    %56 = vector.extract_strided_slice %51 {offsets = [0, 32], sizes = [16, 32], strides = [1, 1]} : vector<16x96xf32> to vector<16x32xf32>
    %57 = vector.shape_cast %56 : vector<16x32xf32> to vector<2x8x32xf32>
    %58 = vector.extract_strided_slice %51 {offsets = [0, 64], sizes = [16, 32], strides = [1, 1]} : vector<16x96xf32> to vector<16x32xf32>
    %59 = vector.shape_cast %58 : vector<16x32xf32> to vector<2x8x32xf32>
    %60 = vector.extract_strided_slice %55 {offsets = [0, 0, 0], sizes = [2, 8, 8], strides = [1, 1, 1]} : vector<2x8x32xf32> to vector<2x8x8xf32>
    %61 = vector.extract_strided_slice %57 {offsets = [0, 0, 0], sizes = [2, 8, 8], strides = [1, 1, 1]} : vector<2x8x32xf32> to vector<2x8x8xf32>
    %62 = vector.extract_strided_slice %59 {offsets = [0, 0, 0], sizes = [2, 8, 8], strides = [1, 1, 1]} : vector<2x8x32xf32> to vector<2x8x8xf32>
    "tpu.trace_start"() <{level = 10 : i32, message = "bqd,bkd->bqk"}> : () -> ()
    %cst_45 = arith.constant dense<0.000000e+00> : vector<2x8x8xf32>
    %63 = tpu.matmul %60, %61, %cst_45 {dimension_numbers = #tpu.dot_dimension_numbers<[2], [2], [1], [1], [0, 0, 0, 1, 1, 1], [0], [0]>} : vector<2x8x8xf32>, vector<2x8x8xf32>, vector<2x8x8xf32> -> vector<2x8x8xf32>
    "tpu.trace_stop"() : () -> ()
    %cst_46 = arith.constant dense<0xFF800000> : vector<2x8xf32>
    %64 = vector.multi_reduction <maximumf>, %63, %cst_46 [2] : vector<2x8x8xf32> to vector<2x8xf32>
    %65 = vector.shape_cast %64 : vector<2x8xf32> to vector<2x8x1xf32>
    %66 = vector.broadcast %65 : vector<2x8x1xf32> to vector<2x8x8xf32>
    %67 = arith.subf %63, %66 : vector<2x8x8xf32>
    %68 = math.exp %67 : vector<2x8x8xf32>
    %cst_47 = arith.constant dense<0.000000e+00> : vector<2x8xf32>
    %69 = vector.multi_reduction <add>, %68, %cst_47 [2] : vector<2x8x8xf32> to vector<2x8xf32>
    %70 = vector.shape_cast %69 : vector<2x8xf32> to vector<2x8x1xf32>
    %71 = tpu.reciprocal %70 {approx = true} : vector<2x8x1xf32> -> vector<2x8x1xf32>
    %72 = vector.broadcast %71 : vector<2x8x1xf32> to vector<2x8x8xf32>
    %73 = arith.mulf %68, %72 : vector<2x8x8xf32>
    "tpu.trace_start"() <{level = 10 : i32, message = "bqk,bkd->bqd"}> : () -> ()
    %cst_48 = arith.constant dense<0.000000e+00> : vector<2x8x8xf32>
    %74 = tpu.matmul %73, %62, %cst_48 {dimension_numbers = #tpu.dot_dimension_numbers<[2], [1], [1], [2], [0, 0, 0, 1, 1, 2], [0], [0]>} : vector<2x8x8xf32>, vector<2x8x8xf32>, vector<2x8x8xf32> -> vector<2x8x8xf32>
    "tpu.trace_stop"() : () -> ()
    %75 = vector.extract_strided_slice %55 {offsets = [0, 0, 8], sizes = [2, 8, 8], strides = [1, 1, 1]} : vector<2x8x32xf32> to vector<2x8x8xf32>
    %76 = vector.extract_strided_slice %57 {offsets = [0, 0, 8], sizes = [2, 8, 8], strides = [1, 1, 1]} : vector<2x8x32xf32> to vector<2x8x8xf32>
    %77 = vector.extract_strided_slice %59 {offsets = [0, 0, 8], sizes = [2, 8, 8], strides = [1, 1, 1]} : vector<2x8x32xf32> to vector<2x8x8xf32>
    "tpu.trace_start"() <{level = 10 : i32, message = "bqd,bkd->bqk"}> : () -> ()
    %cst_49 = arith.constant dense<0.000000e+00> : vector<2x8x8xf32>
    %78 = tpu.matmul %75, %76, %cst_49 {dimension_numbers = #tpu.dot_dimension_numbers<[2], [2], [1], [1], [0, 0, 0, 1, 1, 1], [0], [0]>} : vector<2x8x8xf32>, vector<2x8x8xf32>, vector<2x8x8xf32> -> vector<2x8x8xf32>
    "tpu.trace_stop"() : () -> ()
    %cst_50 = arith.constant dense<0xFF800000> : vector<2x8xf32>
    %79 = vector.multi_reduction <maximumf>, %78, %cst_50 [2] : vector<2x8x8xf32> to vector<2x8xf32>
    %80 = vector.shape_cast %79 : vector<2x8xf32> to vector<2x8x1xf32>
    %81 = vector.broadcast %80 : vector<2x8x1xf32> to vector<2x8x8xf32>
    %82 = arith.subf %78, %81 : vector<2x8x8xf32>
    %83 = math.exp %82 : vector<2x8x8xf32>
    %cst_51 = arith.constant dense<0.000000e+00> : vector<2x8xf32>
    %84 = vector.multi_reduction <add>, %83, %cst_51 [2] : vector<2x8x8xf32> to vector<2x8xf32>
    %85 = vector.shape_cast %84 : vector<2x8xf32> to vector<2x8x1xf32>
    %86 = tpu.reciprocal %85 {approx = true} : vector<2x8x1xf32> -> vector<2x8x1xf32>
    %87 = vector.broadcast %86 : vector<2x8x1xf32> to vector<2x8x8xf32>
    %88 = arith.mulf %83, %87 : vector<2x8x8xf32>
    "tpu.trace_start"() <{level = 10 : i32, message = "bqk,bkd->bqd"}> : () -> ()
    %cst_52 = arith.constant dense<0.000000e+00> : vector<2x8x8xf32>
    %89 = tpu.matmul %88, %77, %cst_52 {dimension_numbers = #tpu.dot_dimension_numbers<[2], [1], [1], [2], [0, 0, 0, 1, 1, 2], [0], [0]>} : vector<2x8x8xf32>, vector<2x8x8xf32>, vector<2x8x8xf32> -> vector<2x8x8xf32>
    "tpu.trace_stop"() : () -> ()
    %90 = vector.extract_strided_slice %55 {offsets = [0, 0, 16], sizes = [2, 8, 8], strides = [1, 1, 1]} : vector<2x8x32xf32> to vector<2x8x8xf32>
    %91 = vector.extract_strided_slice %57 {offsets = [0, 0, 16], sizes = [2, 8, 8], strides = [1, 1, 1]} : vector<2x8x32xf32> to vector<2x8x8xf32>
    %92 = vector.extract_strided_slice %59 {offsets = [0, 0, 16], sizes = [2, 8, 8], strides = [1, 1, 1]} : vector<2x8x32xf32> to vector<2x8x8xf32>
    "tpu.trace_start"() <{level = 10 : i32, message = "bqd,bkd->bqk"}> : () -> ()
    %cst_53 = arith.constant dense<0.000000e+00> : vector<2x8x8xf32>
    %93 = tpu.matmul %90, %91, %cst_53 {dimension_numbers = #tpu.dot_dimension_numbers<[2], [2], [1], [1], [0, 0, 0, 1, 1, 1], [0], [0]>} : vector<2x8x8xf32>, vector<2x8x8xf32>, vector<2x8x8xf32> -> vector<2x8x8xf32>
    "tpu.trace_stop"() : () -> ()
    %cst_54 = arith.constant dense<0xFF800000> : vector<2x8xf32>
    %94 = vector.multi_reduction <maximumf>, %93, %cst_54 [2] : vector<2x8x8xf32> to vector<2x8xf32>
    %95 = vector.shape_cast %94 : vector<2x8xf32> to vector<2x8x1xf32>
    %96 = vector.broadcast %95 : vector<2x8x1xf32> to vector<2x8x8xf32>
    %97 = arith.subf %93, %96 : vector<2x8x8xf32>
    %98 = math.exp %97 : vector<2x8x8xf32>
    %cst_55 = arith.constant dense<0.000000e+00> : vector<2x8xf32>
    %99 = vector.multi_reduction <add>, %98, %cst_55 [2] : vector<2x8x8xf32> to vector<2x8xf32>
    %100 = vector.shape_cast %99 : vector<2x8xf32> to vector<2x8x1xf32>
    %101 = tpu.reciprocal %100 {approx = true} : vector<2x8x1xf32> -> vector<2x8x1xf32>
    %102 = vector.broadcast %101 : vector<2x8x1xf32> to vector<2x8x8xf32>
    %103 = arith.mulf %98, %102 : vector<2x8x8xf32>
    "tpu.trace_start"() <{level = 10 : i32, message = "bqk,bkd->bqd"}> : () -> ()
    %cst_56 = arith.constant dense<0.000000e+00> : vector<2x8x8xf32>
    %104 = tpu.matmul %103, %92, %cst_56 {dimension_numbers = #tpu.dot_dimension_numbers<[2], [1], [1], [2], [0, 0, 0, 1, 1, 2], [0], [0]>} : vector<2x8x8xf32>, vector<2x8x8xf32>, vector<2x8x8xf32> -> vector<2x8x8xf32>
    "tpu.trace_stop"() : () -> ()
    %105 = vector.extract_strided_slice %55 {offsets = [0, 0, 24], sizes = [2, 8, 8], strides = [1, 1, 1]} : vector<2x8x32xf32> to vector<2x8x8xf32>
    %106 = vector.extract_strided_slice %57 {offsets = [0, 0, 24], sizes = [2, 8, 8], strides = [1, 1, 1]} : vector<2x8x32xf32> to vector<2x8x8xf32>
    %107 = vector.extract_strided_slice %59 {offsets = [0, 0, 24], sizes = [2, 8, 8], strides = [1, 1, 1]} : vector<2x8x32xf32> to vector<2x8x8xf32>
    "tpu.trace_start"() <{level = 10 : i32, message = "bqd,bkd->bqk"}> : () -> ()
    %cst_57 = arith.constant dense<0.000000e+00> : vector<2x8x8xf32>
    %108 = tpu.matmul %105, %106, %cst_57 {dimension_numbers = #tpu.dot_dimension_numbers<[2], [2], [1], [1], [0, 0, 0, 1, 1, 1], [0], [0]>} : vector<2x8x8xf32>, vector<2x8x8xf32>, vector<2x8x8xf32> -> vector<2x8x8xf32>
    "tpu.trace_stop"() : () -> ()
    %cst_58 = arith.constant dense<0xFF800000> : vector<2x8xf32>
    %109 = vector.multi_reduction <maximumf>, %108, %cst_58 [2] : vector<2x8x8xf32> to vector<2x8xf32>
    %110 = vector.shape_cast %109 : vector<2x8xf32> to vector<2x8x1xf32>
    %111 = vector.broadcast %110 : vector<2x8x1xf32> to vector<2x8x8xf32>
    %112 = arith.subf %108, %111 : vector<2x8x8xf32>
    %113 = math.exp %112 : vector<2x8x8xf32>
    %cst_59 = arith.constant dense<0.000000e+00> : vector<2x8xf32>
    %114 = vector.multi_reduction <add>, %113, %cst_59 [2] : vector<2x8x8xf32> to vector<2x8xf32>
    %115 = vector.shape_cast %114 : vector<2x8xf32> to vector<2x8x1xf32>
    %116 = tpu.reciprocal %115 {approx = true} : vector<2x8x1xf32> -> vector<2x8x1xf32>
    %117 = vector.broadcast %116 : vector<2x8x1xf32> to vector<2x8x8xf32>
    %118 = arith.mulf %113, %117 : vector<2x8x8xf32>
    "tpu.trace_start"() <{level = 10 : i32, message = "bqk,bkd->bqd"}> : () -> ()
    %cst_60 = arith.constant dense<0.000000e+00> : vector<2x8x8xf32>
    %119 = tpu.matmul %118, %107, %cst_60 {dimension_numbers = #tpu.dot_dimension_numbers<[2], [1], [1], [2], [0, 0, 0, 1, 1, 2], [0], [0]>} : vector<2x8x8xf32>, vector<2x8x8xf32>, vector<2x8x8xf32> -> vector<2x8x8xf32>
    "tpu.trace_stop"() : () -> ()
    %120 = tpu.concatenate %74, %89, %104, %119 in 2 : vector<2x8x8xf32>, vector<2x8x8xf32>, vector<2x8x8xf32>, vector<2x8x8xf32> -> vector<2x8x32xf32>
    %121 = vector.shape_cast %120 : vector<2x8x32xf32> to vector<16x32xf32>
    %cst_61 = arith.constant dense<0.000000e+00> : vector<16x32xf32>
    %122 = tpu.matmul %121, %12, %cst_61 {dimension_numbers = #tpu.dot_dimension_numbers<[1], [0], [0], [1], [0, 0, 1, 1], [], []>} : vector<16x32xf32>, vector<32x32xf32>, vector<16x32xf32> -> vector<16x32xf32>
    %123 = vector.broadcast %14 : vector<1x32xf32> to vector<16x32xf32>
    %124 = arith.addf %122, %123 : vector<16x32xf32>
    %125 = arith.addf %2, %124 : vector<16x32xf32>
    %cst_62 = arith.constant dense<0.000000e+00> : vector<16xf32>
    %126 = vector.multi_reduction <add>, %125, %cst_62 [1] : vector<16x32xf32> to vector<16xf32>
    %127 = vector.shape_cast %126 : vector<16xf32> to vector<16x1xf32>
    %cst_63 = arith.constant 3.200000e+01 : f32
    %128 = vector.broadcast %cst_63 : f32 to vector<16x1xf32>
    %129 = arith.divf %127, %128 : vector<16x1xf32>
    %130 = vector.broadcast %129 : vector<16x1xf32> to vector<16x32xf32>
    %131 = arith.subf %125, %130 : vector<16x32xf32>
    %132 = arith.mulf %131, %131 : vector<16x32xf32>
    %cst_64 = arith.constant dense<0.000000e+00> : vector<16xf32>
    %133 = vector.multi_reduction <add>, %132, %cst_64 [1] : vector<16x32xf32> to vector<16xf32>
    %134 = vector.shape_cast %133 : vector<16xf32> to vector<16x1xf32>
    %cst_65 = arith.constant 3.200000e+01 : f32
    %135 = vector.broadcast %cst_65 : f32 to vector<16x1xf32>
    %136 = arith.divf %134, %135 : vector<16x1xf32>
    %137 = vector.broadcast %129 : vector<16x1xf32> to vector<16x32xf32>
    %138 = arith.subf %125, %137 : vector<16x32xf32>
    %cst_66 = arith.constant 9.99999974E-6 : f32
    %139 = vector.broadcast %cst_66 : f32 to vector<16x1xf32>
    %140 = arith.addf %136, %139 : vector<16x1xf32>
    %141 = math.rsqrt %140 : vector<16x1xf32>
    %142 = vector.broadcast %141 : vector<16x1xf32> to vector<16x32xf32>
    %143 = arith.mulf %138, %142 : vector<16x32xf32>
    %144 = vector.broadcast %16 : vector<1x32xf32> to vector<16x32xf32>
    %145 = arith.mulf %143, %144 : vector<16x32xf32>
    %146 = vector.broadcast %18 : vector<1x32xf32> to vector<16x32xf32>
    %147 = arith.addf %145, %146 : vector<16x32xf32>
    %cst_67 = arith.constant dense<0.000000e+00> : vector<16x128xf32>
    %148 = tpu.matmul %147, %20, %cst_67 {dimension_numbers = #tpu.dot_dimension_numbers<[1], [0], [0], [1], [0, 0, 1, 1], [], []>} : vector<16x32xf32>, vector<32x128xf32>, vector<16x128xf32> -> vector<16x128xf32>
    %149 = vector.broadcast %22 : vector<1x128xf32> to vector<16x128xf32>
    %150 = arith.addf %148, %149 : vector<16x128xf32>
    %151 = arith.mulf %150, %150 : vector<16x128xf32>
    %152 = arith.mulf %150, %151 : vector<16x128xf32>
    %cst_68 = arith.constant 4.471500e-02 : f32
    %153 = vector.broadcast %cst_68 : f32 to vector<16x128xf32>
    %154 = arith.mulf %153, %152 : vector<16x128xf32>
    %155 = arith.addf %150, %154 : vector<16x128xf32>
    %cst_69 = arith.constant 0.797884583 : f32
    %156 = vector.broadcast %cst_69 : f32 to vector<16x128xf32>
    %157 = arith.mulf %156, %155 : vector<16x128xf32>
    %158 = math.tanh %157 : vector<16x128xf32>
    %cst_70 = arith.constant 1.000000e+00 : f32
    %159 = vector.broadcast %cst_70 : f32 to vector<16x128xf32>
    %160 = arith.addf %159, %158 : vector<16x128xf32>
    %cst_71 = arith.constant 5.000000e-01 : f32
    %161 = vector.broadcast %cst_71 : f32 to vector<16x128xf32>
    %162 = arith.mulf %161, %160 : vector<16x128xf32>
    %163 = arith.mulf %150, %162 : vector<16x128xf32>
    %cst_72 = arith.constant dense<0.000000e+00> : vector<16x32xf32>
    %164 = tpu.matmul %163, %24, %cst_72 {dimension_numbers = #tpu.dot_dimension_numbers<[1], [0], [0], [1], [0, 0, 1, 1], [], []>} : vector<16x128xf32>, vector<128x32xf32>, vector<16x32xf32> -> vector<16x32xf32>
    %165 = vector.broadcast %26 : vector<1x32xf32> to vector<16x32xf32>
    %166 = arith.addf %164, %165 : vector<16x32xf32>
    %167 = arith.addf %125, %166 : vector<16x32xf32>
    %c1 = arith.constant 1 : index
    %c0_73 = arith.constant 0 : index
    %c0_74 = arith.constant 0 : index
    %168 = vector.load %arg3[%c1, %c0_73, %c0_74] : memref<2x1x32xf32, #tpu.memory_space<vmem>>, vector<1x1x32xf32>
    %169 = vector.shape_cast %168 : vector<1x1x32xf32> to vector<1x32xf32>
    %c1_75 = arith.constant 1 : index
    %c0_76 = arith.constant 0 : index
    %c0_77 = arith.constant 0 : index
    %170 = vector.load %arg4[%c1_75, %c0_76, %c0_77] : memref<2x1x32xf32, #tpu.memory_space<vmem>>, vector<1x1x32xf32>
    %171 = vector.shape_cast %170 : vector<1x1x32xf32> to vector<1x32xf32>
    %c1_78 = arith.constant 1 : index
    %c0_79 = arith.constant 0 : index
    %c0_80 = arith.constant 0 : index
    %172 = vector.load %arg5[%c1_78, %c0_79, %c0_80] : memref<2x32x96xf32, #tpu.memory_space<vmem>>, vector<1x32x96xf32>
    %173 = vector.shape_cast %172 : vector<1x32x96xf32> to vector<32x96xf32>
    %c1_81 = arith.constant 1 : index
    %c0_82 = arith.constant 0 : index
    %c0_83 = arith.constant 0 : index
    %174 = vector.load %arg6[%c1_81, %c0_82, %c0_83] : memref<2x1x96xf32, #tpu.memory_space<vmem>>, vector<1x1x96xf32>
    %175 = vector.shape_cast %174 : vector<1x1x96xf32> to vector<1x96xf32>
    %c1_84 = arith.constant 1 : index
    %c0_85 = arith.constant 0 : index
    %c0_86 = arith.constant 0 : index
    %176 = vector.load %arg7[%c1_84, %c0_85, %c0_86] : memref<2x32x32xf32, #tpu.memory_space<vmem>>, vector<1x32x32xf32>
    %177 = vector.shape_cast %176 : vector<1x32x32xf32> to vector<32x32xf32>
    %c1_87 = arith.constant 1 : index
    %c0_88 = arith.constant 0 : index
    %c0_89 = arith.constant 0 : index
    %178 = vector.load %arg8[%c1_87, %c0_88, %c0_89] : memref<2x1x32xf32, #tpu.memory_space<vmem>>, vector<1x1x32xf32>
    %179 = vector.shape_cast %178 : vector<1x1x32xf32> to vector<1x32xf32>
    %c1_90 = arith.constant 1 : index
    %c0_91 = arith.constant 0 : index
    %c0_92 = arith.constant 0 : index
    %180 = vector.load %arg9[%c1_90, %c0_91, %c0_92] : memref<2x1x32xf32, #tpu.memory_space<vmem>>, vector<1x1x32xf32>
    %181 = vector.shape_cast %180 : vector<1x1x32xf32> to vector<1x32xf32>
    %c1_93 = arith.constant 1 : index
    %c0_94 = arith.constant 0 : index
    %c0_95 = arith.constant 0 : index
    %182 = vector.load %arg10[%c1_93, %c0_94, %c0_95] : memref<2x1x32xf32, #tpu.memory_space<vmem>>, vector<1x1x32xf32>
    %183 = vector.shape_cast %182 : vector<1x1x32xf32> to vector<1x32xf32>
    %c1_96 = arith.constant 1 : index
    %c0_97 = arith.constant 0 : index
    %c0_98 = arith.constant 0 : index
    %184 = vector.load %arg11[%c1_96, %c0_97, %c0_98] : memref<2x32x128xf32, #tpu.memory_space<vmem>>, vector<1x32x128xf32>
    %185 = vector.shape_cast %184 : vector<1x32x128xf32> to vector<32x128xf32>
    %c1_99 = arith.constant 1 : index
    %c0_100 = arith.constant 0 : index
    %c0_101 = arith.constant 0 : index
    %186 = vector.load %arg12[%c1_99, %c0_100, %c0_101] : memref<2x1x128xf32, #tpu.memory_space<vmem>>, vector<1x1x128xf32>
    %187 = vector.shape_cast %186 : vector<1x1x128xf32> to vector<1x128xf32>
    %c1_102 = arith.constant 1 : index
    %c0_103 = arith.constant 0 : index
    %c0_104 = arith.constant 0 : index
    %188 = vector.load %arg13[%c1_102, %c0_103, %c0_104] : memref<2x128x32xf32, #tpu.memory_space<vmem>>, vector<1x128x32xf32>
    %189 = vector.shape_cast %188 : vector<1x128x32xf32> to vector<128x32xf32>
    %c1_105 = arith.constant 1 : index
    %c0_106 = arith.constant 0 : index
    %c0_107 = arith.constant 0 : index
    %190 = vector.load %arg14[%c1_105, %c0_106, %c0_107] : memref<2x1x32xf32, #tpu.memory_space<vmem>>, vector<1x1x32xf32>
    %191 = vector.shape_cast %190 : vector<1x1x32xf32> to vector<1x32xf32>
    %cst_108 = arith.constant dense<0.000000e+00> : vector<16xf32>
    %192 = vector.multi_reduction <add>, %167, %cst_108 [1] : vector<16x32xf32> to vector<16xf32>
    %193 = vector.shape_cast %192 : vector<16xf32> to vector<16x1xf32>
    %cst_109 = arith.constant 3.200000e+01 : f32
    %194 = vector.broadcast %cst_109 : f32 to vector<16x1xf32>
    %195 = arith.divf %193, %194 : vector<16x1xf32>
    %196 = vector.broadcast %195 : vector<16x1xf32> to vector<16x32xf32>
    %197 = arith.subf %167, %196 : vector<16x32xf32>
    %198 = arith.mulf %197, %197 : vector<16x32xf32>
    %cst_110 = arith.constant dense<0.000000e+00> : vector<16xf32>
    %199 = vector.multi_reduction <add>, %198, %cst_110 [1] : vector<16x32xf32> to vector<16xf32>
    %200 = vector.shape_cast %199 : vector<16xf32> to vector<16x1xf32>
    %cst_111 = arith.constant 3.200000e+01 : f32
    %201 = vector.broadcast %cst_111 : f32 to vector<16x1xf32>
    %202 = arith.divf %200, %201 : vector<16x1xf32>
    %203 = vector.broadcast %195 : vector<16x1xf32> to vector<16x32xf32>
    %204 = arith.subf %167, %203 : vector<16x32xf32>
    %cst_112 = arith.constant 9.99999974E-6 : f32
    %205 = vector.broadcast %cst_112 : f32 to vector<16x1xf32>
    %206 = arith.addf %202, %205 : vector<16x1xf32>
    %207 = math.rsqrt %206 : vector<16x1xf32>
    %208 = vector.broadcast %207 : vector<16x1xf32> to vector<16x32xf32>
    %209 = arith.mulf %204, %208 : vector<16x32xf32>
    %210 = vector.broadcast %169 : vector<1x32xf32> to vector<16x32xf32>
    %211 = arith.mulf %209, %210 : vector<16x32xf32>
    %212 = vector.broadcast %171 : vector<1x32xf32> to vector<16x32xf32>
    %213 = arith.addf %211, %212 : vector<16x32xf32>
    %cst_113 = arith.constant dense<0.000000e+00> : vector<16x96xf32>
    %214 = tpu.matmul %213, %173, %cst_113 {dimension_numbers = #tpu.dot_dimension_numbers<[1], [0], [0], [1], [0, 0, 1, 1], [], []>} : vector<16x32xf32>, vector<32x96xf32>, vector<16x96xf32> -> vector<16x96xf32>
    %215 = vector.broadcast %175 : vector<1x96xf32> to vector<16x96xf32>
    %216 = arith.addf %214, %215 : vector<16x96xf32>
    %217 = vector.extract_strided_slice %216 {offsets = [0, 0], sizes = [16, 32], strides = [1, 1]} : vector<16x96xf32> to vector<16x32xf32>
    %cst_114 = arith.constant 0.353553385 : f32
    %218 = vector.broadcast %cst_114 : f32 to vector<16x32xf32>
    %219 = arith.mulf %217, %218 : vector<16x32xf32>
    %220 = vector.shape_cast %219 : vector<16x32xf32> to vector<2x8x32xf32>
    %221 = vector.extract_strided_slice %216 {offsets = [0, 32], sizes = [16, 32], strides = [1, 1]} : vector<16x96xf32> to vector<16x32xf32>
    %222 = vector.shape_cast %221 : vector<16x32xf32> to vector<2x8x32xf32>
    %223 = vector.extract_strided_slice %216 {offsets = [0, 64], sizes = [16, 32], strides = [1, 1]} : vector<16x96xf32> to vector<16x32xf32>
    %224 = vector.shape_cast %223 : vector<16x32xf32> to vector<2x8x32xf32>
    %225 = vector.extract_strided_slice %220 {offsets = [0, 0, 0], sizes = [2, 8, 8], strides = [1, 1, 1]} : vector<2x8x32xf32> to vector<2x8x8xf32>
    %226 = vector.extract_strided_slice %222 {offsets = [0, 0, 0], sizes = [2, 8, 8], strides = [1, 1, 1]} : vector<2x8x32xf32> to vector<2x8x8xf32>
    %227 = vector.extract_strided_slice %224 {offsets = [0, 0, 0], sizes = [2, 8, 8], strides = [1, 1, 1]} : vector<2x8x32xf32> to vector<2x8x8xf32>
    "tpu.trace_start"() <{level = 10 : i32, message = "bqd,bkd->bqk"}> : () -> ()
    %cst_115 = arith.constant dense<0.000000e+00> : vector<2x8x8xf32>
    %228 = tpu.matmul %225, %226, %cst_115 {dimension_numbers = #tpu.dot_dimension_numbers<[2], [2], [1], [1], [0, 0, 0, 1, 1, 1], [0], [0]>} : vector<2x8x8xf32>, vector<2x8x8xf32>, vector<2x8x8xf32> -> vector<2x8x8xf32>
    "tpu.trace_stop"() : () -> ()
    %cst_116 = arith.constant dense<0xFF800000> : vector<2x8xf32>
    %229 = vector.multi_reduction <maximumf>, %228, %cst_116 [2] : vector<2x8x8xf32> to vector<2x8xf32>
    %230 = vector.shape_cast %229 : vector<2x8xf32> to vector<2x8x1xf32>
    %231 = vector.broadcast %230 : vector<2x8x1xf32> to vector<2x8x8xf32>
    %232 = arith.subf %228, %231 : vector<2x8x8xf32>
    %233 = math.exp %232 : vector<2x8x8xf32>
    %cst_117 = arith.constant dense<0.000000e+00> : vector<2x8xf32>
    %234 = vector.multi_reduction <add>, %233, %cst_117 [2] : vector<2x8x8xf32> to vector<2x8xf32>
    %235 = vector.shape_cast %234 : vector<2x8xf32> to vector<2x8x1xf32>
    %236 = tpu.reciprocal %235 {approx = true} : vector<2x8x1xf32> -> vector<2x8x1xf32>
    %237 = vector.broadcast %236 : vector<2x8x1xf32> to vector<2x8x8xf32>
    %238 = arith.mulf %233, %237 : vector<2x8x8xf32>
    "tpu.trace_start"() <{level = 10 : i32, message = "bqk,bkd->bqd"}> : () -> ()
    %cst_118 = arith.constant dense<0.000000e+00> : vector<2x8x8xf32>
    %239 = tpu.matmul %238, %227, %cst_118 {dimension_numbers = #tpu.dot_dimension_numbers<[2], [1], [1], [2], [0, 0, 0, 1, 1, 2], [0], [0]>} : vector<2x8x8xf32>, vector<2x8x8xf32>, vector<2x8x8xf32> -> vector<2x8x8xf32>
    "tpu.trace_stop"() : () -> ()
    %240 = vector.extract_strided_slice %220 {offsets = [0, 0, 8], sizes = [2, 8, 8], strides = [1, 1, 1]} : vector<2x8x32xf32> to vector<2x8x8xf32>
    %241 = vector.extract_strided_slice %222 {offsets = [0, 0, 8], sizes = [2, 8, 8], strides = [1, 1, 1]} : vector<2x8x32xf32> to vector<2x8x8xf32>
    %242 = vector.extract_strided_slice %224 {offsets = [0, 0, 8], sizes = [2, 8, 8], strides = [1, 1, 1]} : vector<2x8x32xf32> to vector<2x8x8xf32>
    "tpu.trace_start"() <{level = 10 : i32, message = "bqd,bkd->bqk"}> : () -> ()
    %cst_119 = arith.constant dense<0.000000e+00> : vector<2x8x8xf32>
    %243 = tpu.matmul %240, %241, %cst_119 {dimension_numbers = #tpu.dot_dimension_numbers<[2], [2], [1], [1], [0, 0, 0, 1, 1, 1], [0], [0]>} : vector<2x8x8xf32>, vector<2x8x8xf32>, vector<2x8x8xf32> -> vector<2x8x8xf32>
    "tpu.trace_stop"() : () -> ()
    %cst_120 = arith.constant dense<0xFF800000> : vector<2x8xf32>
    %244 = vector.multi_reduction <maximumf>, %243, %cst_120 [2] : vector<2x8x8xf32> to vector<2x8xf32>
    %245 = vector.shape_cast %244 : vector<2x8xf32> to vector<2x8x1xf32>
    %246 = vector.broadcast %245 : vector<2x8x1xf32> to vector<2x8x8xf32>
    %247 = arith.subf %243, %246 : vector<2x8x8xf32>
    %248 = math.exp %247 : vector<2x8x8xf32>
    %cst_121 = arith.constant dense<0.000000e+00> : vector<2x8xf32>
    %249 = vector.multi_reduction <add>, %248, %cst_121 [2] : vector<2x8x8xf32> to vector<2x8xf32>
    %250 = vector.shape_cast %249 : vector<2x8xf32> to vector<2x8x1xf32>
    %251 = tpu.reciprocal %250 {approx = true} : vector<2x8x1xf32> -> vector<2x8x1xf32>
    %252 = vector.broadcast %251 : vector<2x8x1xf32> to vector<2x8x8xf32>
    %253 = arith.mulf %248, %252 : vector<2x8x8xf32>
    "tpu.trace_start"() <{level = 10 : i32, message = "bqk,bkd->bqd"}> : () -> ()
    %cst_122 = arith.constant dense<0.000000e+00> : vector<2x8x8xf32>
    %254 = tpu.matmul %253, %242, %cst_122 {dimension_numbers = #tpu.dot_dimension_numbers<[2], [1], [1], [2], [0, 0, 0, 1, 1, 2], [0], [0]>} : vector<2x8x8xf32>, vector<2x8x8xf32>, vector<2x8x8xf32> -> vector<2x8x8xf32>
    "tpu.trace_stop"() : () -> ()
    %255 = vector.extract_strided_slice %220 {offsets = [0, 0, 16], sizes = [2, 8, 8], strides = [1, 1, 1]} : vector<2x8x32xf32> to vector<2x8x8xf32>
    %256 = vector.extract_strided_slice %222 {offsets = [0, 0, 16], sizes = [2, 8, 8], strides = [1, 1, 1]} : vector<2x8x32xf32> to vector<2x8x8xf32>
    %257 = vector.extract_strided_slice %224 {offsets = [0, 0, 16], sizes = [2, 8, 8], strides = [1, 1, 1]} : vector<2x8x32xf32> to vector<2x8x8xf32>
    "tpu.trace_start"() <{level = 10 : i32, message = "bqd,bkd->bqk"}> : () -> ()
    %cst_123 = arith.constant dense<0.000000e+00> : vector<2x8x8xf32>
    %258 = tpu.matmul %255, %256, %cst_123 {dimension_numbers = #tpu.dot_dimension_numbers<[2], [2], [1], [1], [0, 0, 0, 1, 1, 1], [0], [0]>} : vector<2x8x8xf32>, vector<2x8x8xf32>, vector<2x8x8xf32> -> vector<2x8x8xf32>
    "tpu.trace_stop"() : () -> ()
    %cst_124 = arith.constant dense<0xFF800000> : vector<2x8xf32>
    %259 = vector.multi_reduction <maximumf>, %258, %cst_124 [2] : vector<2x8x8xf32> to vector<2x8xf32>
    %260 = vector.shape_cast %259 : vector<2x8xf32> to vector<2x8x1xf32>
    %261 = vector.broadcast %260 : vector<2x8x1xf32> to vector<2x8x8xf32>
    %262 = arith.subf %258, %261 : vector<2x8x8xf32>
    %263 = math.exp %262 : vector<2x8x8xf32>
    %cst_125 = arith.constant dense<0.000000e+00> : vector<2x8xf32>
    %264 = vector.multi_reduction <add>, %263, %cst_125 [2] : vector<2x8x8xf32> to vector<2x8xf32>
    %265 = vector.shape_cast %264 : vector<2x8xf32> to vector<2x8x1xf32>
    %266 = tpu.reciprocal %265 {approx = true} : vector<2x8x1xf32> -> vector<2x8x1xf32>
    %267 = vector.broadcast %266 : vector<2x8x1xf32> to vector<2x8x8xf32>
    %268 = arith.mulf %263, %267 : vector<2x8x8xf32>
    "tpu.trace_start"() <{level = 10 : i32, message = "bqk,bkd->bqd"}> : () -> ()
    %cst_126 = arith.constant dense<0.000000e+00> : vector<2x8x8xf32>
    %269 = tpu.matmul %268, %257, %cst_126 {dimension_numbers = #tpu.dot_dimension_numbers<[2], [1], [1], [2], [0, 0, 0, 1, 1, 2], [0], [0]>} : vector<2x8x8xf32>, vector<2x8x8xf32>, vector<2x8x8xf32> -> vector<2x8x8xf32>
    "tpu.trace_stop"() : () -> ()
    %270 = vector.extract_strided_slice %220 {offsets = [0, 0, 24], sizes = [2, 8, 8], strides = [1, 1, 1]} : vector<2x8x32xf32> to vector<2x8x8xf32>
    %271 = vector.extract_strided_slice %222 {offsets = [0, 0, 24], sizes = [2, 8, 8], strides = [1, 1, 1]} : vector<2x8x32xf32> to vector<2x8x8xf32>
    %272 = vector.extract_strided_slice %224 {offsets = [0, 0, 24], sizes = [2, 8, 8], strides = [1, 1, 1]} : vector<2x8x32xf32> to vector<2x8x8xf32>
    "tpu.trace_start"() <{level = 10 : i32, message = "bqd,bkd->bqk"}> : () -> ()
    %cst_127 = arith.constant dense<0.000000e+00> : vector<2x8x8xf32>
    %273 = tpu.matmul %270, %271, %cst_127 {dimension_numbers = #tpu.dot_dimension_numbers<[2], [2], [1], [1], [0, 0, 0, 1, 1, 1], [0], [0]>} : vector<2x8x8xf32>, vector<2x8x8xf32>, vector<2x8x8xf32> -> vector<2x8x8xf32>
    "tpu.trace_stop"() : () -> ()
    %cst_128 = arith.constant dense<0xFF800000> : vector<2x8xf32>
    %274 = vector.multi_reduction <maximumf>, %273, %cst_128 [2] : vector<2x8x8xf32> to vector<2x8xf32>
    %275 = vector.shape_cast %274 : vector<2x8xf32> to vector<2x8x1xf32>
    %276 = vector.broadcast %275 : vector<2x8x1xf32> to vector<2x8x8xf32>
    %277 = arith.subf %273, %276 : vector<2x8x8xf32>
    %278 = math.exp %277 : vector<2x8x8xf32>
    %cst_129 = arith.constant dense<0.000000e+00> : vector<2x8xf32>
    %279 = vector.multi_reduction <add>, %278, %cst_129 [2] : vector<2x8x8xf32> to vector<2x8xf32>
    %280 = vector.shape_cast %279 : vector<2x8xf32> to vector<2x8x1xf32>
    %281 = tpu.reciprocal %280 {approx = true} : vector<2x8x1xf32> -> vector<2x8x1xf32>
    %282 = vector.broadcast %281 : vector<2x8x1xf32> to vector<2x8x8xf32>
    %283 = arith.mulf %278, %282 : vector<2x8x8xf32>
    "tpu.trace_start"() <{level = 10 : i32, message = "bqk,bkd->bqd"}> : () -> ()
    %cst_130 = arith.constant dense<0.000000e+00> : vector<2x8x8xf32>
    %284 = tpu.matmul %283, %272, %cst_130 {dimension_numbers = #tpu.dot_dimension_numbers<[2], [1], [1], [2], [0, 0, 0, 1, 1, 2], [0], [0]>} : vector<2x8x8xf32>, vector<2x8x8xf32>, vector<2x8x8xf32> -> vector<2x8x8xf32>
    "tpu.trace_stop"() : () -> ()
    %285 = tpu.concatenate %239, %254, %269, %284 in 2 : vector<2x8x8xf32>, vector<2x8x8xf32>, vector<2x8x8xf32>, vector<2x8x8xf32> -> vector<2x8x32xf32>
    %286 = vector.shape_cast %285 : vector<2x8x32xf32> to vector<16x32xf32>
    %cst_131 = arith.constant dense<0.000000e+00> : vector<16x32xf32>
    %287 = tpu.matmul %286, %177, %cst_131 {dimension_numbers = #tpu.dot_dimension_numbers<[1], [0], [0], [1], [0, 0, 1, 1], [], []>} : vector<16x32xf32>, vector<32x32xf32>, vector<16x32xf32> -> vector<16x32xf32>
    %288 = vector.broadcast %179 : vector<1x32xf32> to vector<16x32xf32>
    %289 = arith.addf %287, %288 : vector<16x32xf32>
    %290 = arith.addf %167, %289 : vector<16x32xf32>
    %cst_132 = arith.constant dense<0.000000e+00> : vector<16xf32>
    %291 = vector.multi_reduction <add>, %290, %cst_132 [1] : vector<16x32xf32> to vector<16xf32>
    %292 = vector.shape_cast %291 : vector<16xf32> to vector<16x1xf32>
    %cst_133 = arith.constant 3.200000e+01 : f32
    %293 = vector.broadcast %cst_133 : f32 to vector<16x1xf32>
    %294 = arith.divf %292, %293 : vector<16x1xf32>
    %295 = vector.broadcast %294 : vector<16x1xf32> to vector<16x32xf32>
    %296 = arith.subf %290, %295 : vector<16x32xf32>
    %297 = arith.mulf %296, %296 : vector<16x32xf32>
    %cst_134 = arith.constant dense<0.000000e+00> : vector<16xf32>
    %298 = vector.multi_reduction <add>, %297, %cst_134 [1] : vector<16x32xf32> to vector<16xf32>
    %299 = vector.shape_cast %298 : vector<16xf32> to vector<16x1xf32>
    %cst_135 = arith.constant 3.200000e+01 : f32
    %300 = vector.broadcast %cst_135 : f32 to vector<16x1xf32>
    %301 = arith.divf %299, %300 : vector<16x1xf32>
    %302 = vector.broadcast %294 : vector<16x1xf32> to vector<16x32xf32>
    %303 = arith.subf %290, %302 : vector<16x32xf32>
    %cst_136 = arith.constant 9.99999974E-6 : f32
    %304 = vector.broadcast %cst_136 : f32 to vector<16x1xf32>
    %305 = arith.addf %301, %304 : vector<16x1xf32>
    %306 = math.rsqrt %305 : vector<16x1xf32>
    %307 = vector.broadcast %306 : vector<16x1xf32> to vector<16x32xf32>
    %308 = arith.mulf %303, %307 : vector<16x32xf32>
    %309 = vector.broadcast %181 : vector<1x32xf32> to vector<16x32xf32>
    %310 = arith.mulf %308, %309 : vector<16x32xf32>
    %311 = vector.broadcast %183 : vector<1x32xf32> to vector<16x32xf32>
    %312 = arith.addf %310, %311 : vector<16x32xf32>
    %cst_137 = arith.constant dense<0.000000e+00> : vector<16x128xf32>
    %313 = tpu.matmul %312, %185, %cst_137 {dimension_numbers = #tpu.dot_dimension_numbers<[1], [0], [0], [1], [0, 0, 1, 1], [], []>} : vector<16x32xf32>, vector<32x128xf32>, vector<16x128xf32> -> vector<16x128xf32>
    %314 = vector.broadcast %187 : vector<1x128xf32> to vector<16x128xf32>
    %315 = arith.addf %313, %314 : vector<16x128xf32>
    %316 = arith.mulf %315, %315 : vector<16x128xf32>
    %317 = arith.mulf %315, %316 : vector<16x128xf32>
    %cst_138 = arith.constant 4.471500e-02 : f32
    %318 = vector.broadcast %cst_138 : f32 to vector<16x128xf32>
    %319 = arith.mulf %318, %317 : vector<16x128xf32>
    %320 = arith.addf %315, %319 : vector<16x128xf32>
    %cst_139 = arith.constant 0.797884583 : f32
    %321 = vector.broadcast %cst_139 : f32 to vector<16x128xf32>
    %322 = arith.mulf %321, %320 : vector<16x128xf32>
    %323 = math.tanh %322 : vector<16x128xf32>
    %cst_140 = arith.constant 1.000000e+00 : f32
    %324 = vector.broadcast %cst_140 : f32 to vector<16x128xf32>
    %325 = arith.addf %324, %323 : vector<16x128xf32>
    %cst_141 = arith.constant 5.000000e-01 : f32
    %326 = vector.broadcast %cst_141 : f32 to vector<16x128xf32>
    %327 = arith.mulf %326, %325 : vector<16x128xf32>
    %328 = arith.mulf %315, %327 : vector<16x128xf32>
    %cst_142 = arith.constant dense<0.000000e+00> : vector<16x32xf32>
    %329 = tpu.matmul %328, %189, %cst_142 {dimension_numbers = #tpu.dot_dimension_numbers<[1], [0], [0], [1], [0, 0, 1, 1], [], []>} : vector<16x128xf32>, vector<128x32xf32>, vector<16x32xf32> -> vector<16x32xf32>
    %330 = vector.broadcast %191 : vector<1x32xf32> to vector<16x32xf32>
    %331 = arith.addf %329, %330 : vector<16x32xf32>
    %332 = arith.addf %290, %331 : vector<16x32xf32>
    %c0_143 = arith.constant 0 : index
    %c0_144 = arith.constant 0 : index
    %333 = vector.load %arg15[%c0_143, %c0_144] : memref<1x32xf32, #tpu.memory_space<vmem>>, vector<1x32xf32>
    %c0_145 = arith.constant 0 : index
    %c0_146 = arith.constant 0 : index
    %334 = vector.load %arg16[%c0_145, %c0_146] : memref<1x32xf32, #tpu.memory_space<vmem>>, vector<1x32xf32>
    %cst_147 = arith.constant dense<0.000000e+00> : vector<16xf32>
    %335 = vector.multi_reduction <add>, %332, %cst_147 [1] : vector<16x32xf32> to vector<16xf32>
    %336 = vector.shape_cast %335 : vector<16xf32> to vector<16x1xf32>
    %cst_148 = arith.constant 3.200000e+01 : f32
    %337 = vector.broadcast %cst_148 : f32 to vector<16x1xf32>
    %338 = arith.divf %336, %337 : vector<16x1xf32>
    %339 = vector.broadcast %338 : vector<16x1xf32> to vector<16x32xf32>
    %340 = arith.subf %332, %339 : vector<16x32xf32>
    %341 = arith.mulf %340, %340 : vector<16x32xf32>
    %cst_149 = arith.constant dense<0.000000e+00> : vector<16xf32>
    %342 = vector.multi_reduction <add>, %341, %cst_149 [1] : vector<16x32xf32> to vector<16xf32>
    %343 = vector.shape_cast %342 : vector<16xf32> to vector<16x1xf32>
    %cst_150 = arith.constant 3.200000e+01 : f32
    %344 = vector.broadcast %cst_150 : f32 to vector<16x1xf32>
    %345 = arith.divf %343, %344 : vector<16x1xf32>
    %346 = vector.broadcast %338 : vector<16x1xf32> to vector<16x32xf32>
    %347 = arith.subf %332, %346 : vector<16x32xf32>
    %cst_151 = arith.constant 9.99999974E-6 : f32
    %348 = vector.broadcast %cst_151 : f32 to vector<16x1xf32>
    %349 = arith.addf %345, %348 : vector<16x1xf32>
    %350 = math.rsqrt %349 : vector<16x1xf32>
    %351 = vector.broadcast %350 : vector<16x1xf32> to vector<16x32xf32>
    %352 = arith.mulf %347, %351 : vector<16x32xf32>
    %353 = vector.broadcast %333 : vector<1x32xf32> to vector<16x32xf32>
    %354 = arith.mulf %352, %353 : vector<16x32xf32>
    %355 = vector.broadcast %334 : vector<1x32xf32> to vector<16x32xf32>
    %356 = arith.addf %354, %355 : vector<16x32xf32>
    %c0_152 = arith.constant 0 : index
    %c0_153 = arith.constant 0 : index
    %357 = vector.load %arg17[%c0_152, %c0_153] : memref<32x32xf32, #tpu.memory_space<vmem>>, vector<32x32xf32>
    %cst_154 = arith.constant dense<0.000000e+00> : vector<16x32xf32>
    %358 = tpu.matmul %356, %357, %cst_154 {dimension_numbers = #tpu.dot_dimension_numbers<[1], [0], [0], [1], [0, 0, 1, 1], [], []>} : vector<16x32xf32>, vector<32x32xf32>, vector<16x32xf32> -> vector<16x32xf32>
    %c0_155 = arith.constant 0 : index
    %c0_156 = arith.constant 0 : index
    %359 = vector.load %arg18[%c0_155, %c0_156] : memref<16x32xf32, #tpu.memory_space<vmem>>, vector<16x32xf32>
    tpu.vector_store %arg18[%c0_155, %c0_156], %358 {strides = array<i32>} : memref<16x32xf32, #tpu.memory_space<vmem>>, vector<16x32xf32>,
    return
  }
  func.func @transform_0(%arg0: i32) -> (i32, i32) {
    %c0_i32 = arith.constant 0 : i32
    %c0_i32_0 = arith.constant 0 : i32
    %c0_i32_1 = arith.constant 0 : i32
    return %c0_i32, %c0_i32_0 : i32, i32
  }
  func.func @transform_1(%arg0: i32) -> (i32, i32) {
    %c0_i32 = arith.constant 0 : i32
    %c0_i32_0 = arith.constant 0 : i32
    %c0_i32_1 = arith.constant 0 : i32
    return %c0_i32, %c0_i32_0 : i32, i32
  }
  func.func @transform_2(%arg0: i32) -> (i32, i32, i32) {
    %c0_i32 = arith.constant 0 : i32
    %c0_i32_0 = arith.constant 0 : i32
    %c0_i32_1 = arith.constant 0 : i32
    %c0_i32_2 = arith.constant 0 : i32
    return %c0_i32, %c0_i32_0, %c0_i32_1 : i32, i32, i32
  }
  func.func @transform_3(%arg0: i32) -> (i32, i32, i32) {
    %c0_i32 = arith.constant 0 : i32
    %c0_i32_0 = arith.constant 0 : i32
    %c0_i32_1 = arith.constant 0 : i32
    %c0_i32_2 = arith.constant 0 : i32
    return %c0_i32, %c0_i32_0, %c0_i32_1 : i32, i32, i32
  }
  func.func @transform_4(%arg0: i32) -> (i32, i32, i32) {
    %c0_i32 = arith.constant 0 : i32
    %c0_i32_0 = arith.constant 0 : i32
    %c0_i32_1 = arith.constant 0 : i32
    %c0_i32_2 = arith.constant 0 : i32
    return %c0_i32, %c0_i32_0, %c0_i32_1 : i32, i32, i32
  }
  func.func @transform_5(%arg0: i32) -> (i32, i32, i32) {
    %c0_i32 = arith.constant 0 : i32
    %c0_i32_0 = arith.constant 0 : i32
    %c0_i32_1 = arith.constant 0 : i32
    %c0_i32_2 = arith.constant 0 : i32
    return %c0_i32, %c0_i32_0, %c0_i32_1 : i32, i32, i32
  }
  func.func @transform_6(%arg0: i32) -> (i32, i32, i32) {
    %c0_i32 = arith.constant 0 : i32
    %c0_i32_0 = arith.constant 0 : i32
    %c0_i32_1 = arith.constant 0 : i32
    %c0_i32_2 = arith.constant 0 : i32
    return %c0_i32, %c0_i32_0, %c0_i32_1 : i32, i32, i32
  }
  func.func @transform_7(%arg0: i32) -> (i32, i32, i32) {
    %c0_i32 = arith.constant 0 : i32
    %c0_i32_0 = arith.constant 0 : i32
    %c0_i32_1 = arith.constant 0 : i32
    %c0_i32_2 = arith.constant 0 : i32
    return %c0_i32, %c0_i32_0, %c0_i32_1 : i32, i32, i32
  }
  func.func @transform_8(%arg0: i32) -> (i32, i32, i32) {
    %c0_i32 = arith.constant 0 : i32
    %c0_i32_0 = arith.constant 0 : i32
    %c0_i32_1 = arith.constant 0 : i32
    %c0_i32_2 = arith.constant 0 : i32
    return %c0_i32, %c0_i32_0, %c0_i32_1 : i32, i32, i32
  }
  func.func @transform_9(%arg0: i32) -> (i32, i32, i32) {
    %c0_i32 = arith.constant 0 : i32
    %c0_i32_0 = arith.constant 0 : i32
    %c0_i32_1 = arith.constant 0 : i32
    %c0_i32_2 = arith.constant 0 : i32
    return %c0_i32, %c0_i32_0, %c0_i32_1 : i32, i32, i32
  }
  func.func @transform_10(%arg0: i32) -> (i32, i32, i32) {
    %c0_i32 = arith.constant 0 : i32
    %c0_i32_0 = arith.constant 0 : i32
    %c0_i32_1 = arith.constant 0 : i32
    %c0_i32_2 = arith.constant 0 : i32
    return %c0_i32, %c0_i32_0, %c0_i32_1 : i32, i32, i32
  }
  func.func @transform_11(%arg0: i32) -> (i32, i32, i32) {
    %c0_i32 = arith.constant 0 : i32
    %c0_i32_0 = arith.constant 0 : i32
    %c0_i32_1 = arith.constant 0 : i32
    %c0_i32_2 = arith.constant 0 : i32
    return %c0_i32, %c0_i32_0, %c0_i32_1 : i32, i32, i32
  }
  func.func @transform_12(%arg0: i32) -> (i32, i32, i32) {
    %c0_i32 = arith.constant 0 : i32
    %c0_i32_0 = arith.constant 0 : i32
    %c0_i32_1 = arith.constant 0 : i32
    %c0_i32_2 = arith.constant 0 : i32
    return %c0_i32, %c0_i32_0, %c0_i32_1 : i32, i32, i32
  }
  func.func @transform_13(%arg0: i32) -> (i32, i32, i32) {
    %c0_i32 = arith.constant 0 : i32
    %c0_i32_0 = arith.constant 0 : i32
    %c0_i32_1 = arith.constant 0 : i32
    %c0_i32_2 = arith.constant 0 : i32
    return %c0_i32, %c0_i32_0, %c0_i32_1 : i32, i32, i32
  }
  func.func @transform_14(%arg0: i32) -> (i32, i32) {
    %c0_i32 = arith.constant 0 : i32
    %c0_i32_0 = arith.constant 0 : i32
    %c0_i32_1 = arith.constant 0 : i32
    return %c0_i32, %c0_i32_0 : i32, i32
  }
  func.func @transform_15(%arg0: i32) -> (i32, i32) {
    %c0_i32 = arith.constant 0 : i32
    %c0_i32_0 = arith.constant 0 : i32
    %c0_i32_1 = arith.constant 0 : i32
    return %c0_i32, %c0_i32_0 : i32, i32
  }
  func.func @transform_16(%arg0: i32) -> (i32, i32) {
    %c0_i32 = arith.constant 0 : i32
    %c0_i32_0 = arith.constant 0 : i32
    %c0_i32_1 = arith.constant 0 : i32
    return %c0_i32, %c0_i32_0 : i32, i32
  }
  func.func @transform_17(%arg0: i32) -> (i32, i32) {
    %c0_i32 = arith.constant 0 : i32
    %c0_i32_0 = arith.constant 0 : i32
    %c0_i32_1 = arith.constant 0 : i32
    return %c0_i32, %c0_i32_0 : i32, i32
  }
}

</mosaic_0001>

<bundles_post_ra>
// kernel: stack_forward.1
= control target key start
LH: loop header
LB: loop body
LE: loop exit
PB: predicated region body
PF: predicated region fallthrough
CT: control target
= control target key end

     0   :  { %s2823_s0 = inlined_call_operand.vmem [shape: f32[16,32], index: 0, kind: input, shape index: {}]   ;;  %s2824_s1 = inlined_call_operand.vmem [shape: f32[16,32], index: 1, kind: input, shape index: {}]   ;;  %s2825_s2 = inlined_call_operand.vmem [shape: f32[2,1,32], index: 2, kind: input, shape index: {}]   ;;  %s2826_s3 = inlined_call_operand.vmem [shape: f32[2,1,32], index: 3, kind: input, shape index: {}]   ;;  %s2827_s4 = inlined_call_operand.vmem [shape: f32[2,32,96], index: 4, kind: input, shape index: {}]   ;;  %s2828_s5 = inlined_call_operand.vmem [shape: f32[2,1,96], index: 5, kind: input, shape index: {}]   ;;  %s2829_s6 = inlined_call_operand.vmem [shape: f32[2,32,32], index: 6, kind: input, shape index: {}]   ;;  %s2830_s7 = inlined_call_operand.vmem [shape: f32[2,1,32], index: 7, kind: input, shape index: {}]   ;;  %s2831_s8 = inlined_call_operand.vmem [shape: f32[2,1,32], index: 8, kind: input, shape index: {}]   ;;  %s2832_s9 = inlined_call_operand.vmem [shape: f32[2,1,32], index: 9, kind: input, shape index: {}]   ;;  %s2833_s10 = inlined_call_operand.vmem [shape: f32[2,32,128], index: 10, kind: input, shape index: {}]   ;;  %s2834_s11 = inlined_call_operand.vmem [shape: f32[2,1,128], index: 11, kind: input, shape index: {}]   ;;  %s2835_s12 = inlined_call_operand.vmem [shape: f32[2,128,32], index: 12, kind: input, shape index: {}]   ;;  %s2836_s13 = inlined_call_operand.vmem [shape: f32[2,1,32], index: 13, kind: input, shape index: {}]   ;;  %s2837_s14 = inlined_call_operand.vmem [shape: f32[1,32], index: 14, kind: input, shape index: {}]   ;;  %s2838_s15 = inlined_call_operand.vmem [shape: f32[1,32], index: 15, kind: input, shape index: {}]   ;;  %s2839_s16 = inlined_call_operand.vmem [shape: f32[32,32], index: 16, kind: input, shape index: {}]   ;;  %s2840_s17 = inlined_call_operand.hbm [shape: f32[16,32], index: 17, kind: output, shape index: {}]  }
   0x1   :  { %2858 = sst [smem:[#allocation5_spill]] %s2823_s0 }
   0x2   :  { %2859 = sst [smem:[#allocation6_spill]] %s2824_s1 }
   0x3   :  { %2860 = sst [smem:[#allocation7_spill]] %s2834_s11 }
   0x4   :  { %s2861_s26 = sld [smem:[#allocation5_spill]]  ;;  %vm99_vm0 = vcmask 261120  }
   0x5   :  { %s2862_s11 = sld [smem:[#allocation6_spill]] }
   0xa   :  { %v57_v0 = vld [vmem:[%s2861_s26] sm:$0xff]  ;;  %v58_v2 = vld [vmem:[%s2861_s26 + $0x8] sm:$0xff] }
   0xb   :  { %v59_v1 = vld [vmem:[%s2862_s11] sm:$0xff]  ;;  %v60_v4 = vld [vmem:[%s2862_s11 + $0x8] sm:$0xff] }
   0xc   :  { %v2269_v3 = vadd.f32 %v59_v1, %v57_v0  ;;  %v2276_v6 = vadd.f32 %v60_v4, %v58_v2 }
   0xe   :  { %v100_v5 = vsel %vm99_vm0, %v2269_v3, 0.0 }
   0xf   :  { %101 = vadd.xlane.f32.xlu0 %v100_v5 }
  0x10   :  { %22 = vsyncpa [#allocation3], 0  ;;  %v103_v7 = vsel %vm99_vm0, %v2276_v6, 0.0  ;;  %v2153_v8 = vmov 32.0   ;;  %v68_v25 = vld [vmem:[%s2827_s4 + $0x18] sm:$0xff]  ;;  %v67_v26 = vld [vmem:[%s2827_s4 + $0x10] sm:$0xff] }
  0x11   :  { %2033 = vrcp.f32 %v2153_v8  ;;  %182 = vmatpush.msra.mxu0 %v68_v25  ;;  %v66_v27 = vld [vmem:[%s2827_s4 + $0x8] sm:$0xff]  ;;  %v65_v28 = vld [vmem:[%s2827_s4] sm:$0xff]  ;;  %s2154_s30 = smov 96   ;;  %s2155_s18 = smov 88   ;;  %vm198_vm8 = vcmask 64512   ;;  %vm742_vm9 = vcmask 130048  }
  0x12   :  { %v2015_v43 = vld [vmem:[%s2825_s2] ss:$0 sm:$0xff]  ;;  %s2156_s11 = smov 120   ;;  %s2157_s19 = smov 112   ;;  %vm745_vm10 = vcmask 195584  }
  0x13   :  { %183 = vmatpush.msra.mxu0 %v67_v26  ;;  %v2016_v47 = vld [vmem:[%s2826_s3] ss:$0 sm:$0xff]  ;;  %s2846_s1 = smov 104   ;;  %s2852_s20 = smov 80  }
  0x14   :  { %v2017_v57 = vld [vmem:[%s2828_s5] ss:$0 sm:$0xff]  ;;  %s2848_s21 = smov 72   ;;  %s2161_s22 = smov 56  }
  0x15   :  { %184 = vmatpush.msra.mxu0 %v66_v27  ;;  %s2162_s23 = smov 64   ;;  %s2844_s24 = smov 48  }
  0x16   :  { %s2845_s25 = smov 40   ;;  %s2850_s26 = smov 8  }
  0x17   :  { %104 = vadd.xlane.f32.xlu0 %v103_v7  ;;  %v2034_v9 = vpop.eup %2033  ;;  %185 = vmatpush.msra.mxu0 %v65_v28  ;;  %s2856_s27 = smov 16   ;;  %s2854_s28 = smov 24  }
  0x18   :  { %v107_v10 = vmul.f32 32.0, %v2034_v9  ;;  %vm111_vm1 = vweird.f32 %v2034_v9  ;;  %s2871_s0 = smov 24  }
  0x1a   :  { %v108_v11 = vsub.f32 1.0, %v107_v10 }
  0x1c   :  { %v109_v12 = vmul.f32 %v2034_v9, %v108_v11 }
  0x1e   :  { %v110_v13 = vadd.f32 %v2034_v9, %v109_v12 }
  0x20   :  { %v2280_v14 = vsel %vm111_vm1, %v2034_v9, %v110_v13 }
  0x82   :  { %v102_v15 = vpop.xlane.xlu0 %101 }
  0x83   :  { %v113_v16 = vmul.f32 %v2280_v14, %v102_v15 }
  0x85   :  { %v115_v17 = vsub.f32 %v2269_v3, %v113_v16 }
  0x87   :  { %v117_v18 = vmul.f32 %v115_v17, %v115_v17 }
  0x89   :  { %v119_v19 = vsel %vm99_vm0, %v117_v18, 0.0 }
  0x8a   :  { %120 = vadd.xlane.f32.xlu1 %v119_v19  ;;  %v105_v20 = vpop.xlane.xlu0 %104 }
  0x8b   :  { %v114_v21 = vmul.f32 %v2280_v14, %v105_v20 }
  0x8d   :  { %v116_v22 = vsub.f32 %v2276_v6, %v114_v21 }
  0x8f   :  { %v118_v23 = vmul.f32 %v116_v22, %v116_v22 }
  0x91   :  { %v122_v24 = vsel %vm99_vm0, %v118_v23, 0.0 }
  0x92   :  { %123 = vadd.xlane.f32.xlu1 %v122_v24 }
  0xfd   :  { %v121_v29 = vpop.xlane.xlu1 %120 }
  0xfe   :  { %v125_v30 = vmul.f32 %v121_v29, %v2280_v14 }
 0x100   :  { %v127_v31 = vadd.f32 1e-05, %v125_v30 }
 0x102   :  { %2035 = vrsqrt.f32 %v127_v31  ;;  %vm135_vm3 = vweird.f32 %v127_v31 }
 0x105   :  { %v124_v32 = vpop.xlane.xlu1 %123 }
 0x106   :  { %v126_v33 = vmul.f32 %v124_v32, %v2280_v14 }
 0x108   :  { %v2036_v34 = vpop.eup %2035  ;;  %v128_v35 = vadd.f32 1e-05, %v126_v33 }
 0x109   :  { %v130_v36 = vmul.f32 %v2036_v34, %v127_v31  ;;  %vm136_vm2 = vweird.f32 %v2036_v34 }
 0x10a   :  { %2037 = vrsqrt.f32 %v128_v35  ;;  %vm137_vm4 = vmor %vm135_vm3, %vm136_vm2  ;;  %vm145_vm6 = vweird.f32 %v128_v35 }
 0x10b   :  { %v131_v37 = vmul.f32 %v2036_v34, %v130_v36 }
 0x10d   :  { %v132_v38 = vmul.f32 0.5, %v131_v37 }
 0x10f   :  { %v133_v39 = vsub.f32 1.5, %v132_v38 }
 0x110   :  { %v2038_v40 = vpop.eup %2037 }
 0x111   :  { %v134_v41 = vmul.f32 %v2036_v34, %v133_v39  ;;  %v140_v42 = vmul.f32 %v2038_v40, %v128_v35  ;;  %vm146_vm5 = vweird.f32 %v2038_v40 }
 0x112   :  { %vm147_vm7 = vmor %vm145_vm6, %vm146_vm5 }
 0x113   :  { %v138_v44 = vsel %vm137_vm4, %v2036_v34, %v134_v41  ;;  %v141_v45 = vmul.f32 %v2038_v40, %v140_v42 }
 0x114   :  { %v149_v46 = vmul.f32 %v138_v44, %v115_v17 }
 0x115   :  { %v142_v48 = vmul.f32 0.5, %v141_v45 }
 0x116   :  { %v154_v49 = vmul.f32 %v2015_v43, %v149_v46 }
 0x117   :  { %v143_v50 = vsub.f32 1.5, %v142_v48 }
 0x118   :  { %v159_v51 = vadd.f32 %v2016_v47, %v154_v49 }
 0x119   :  { %v144_v52 = vmul.f32 %v2038_v40, %v143_v50 }
 0x11a   :  { %1875 = vmatmul.msk.f32.vlgmr.msra.gmra.mxu0 %vm99_vm0, %v159_v51 }
 0x11b   :  { %v148_v53 = vsel %vm147_vm7, %v2038_v40, %v144_v52 }
 0x11c   :  { %v150_v54 = vmul.f32 %v148_v53, %v116_v22 }
 0x11e   :  { %v155_v55 = vmul.f32 %v2015_v43, %v150_v54 }
 0x120   :  { %v160_v56 = vadd.f32 %v2016_v47, %v155_v55 }
 0x122   :  { %1876 = vmatmul.msk.f32.gmra.mxu0 %vm99_vm0, %v160_v56 }
 0x197   :  { %v187_v58 = vpop.f32.mrf.mxu0 }
 0x198   :  { %v2313_v59 = vadd.f32 %v2017_v57, %v187_v58 }
 0x19a   :  { %196 = vrot.lane.b32.xlu2 %v2313_v59, %s2154_s30  ;;  %v193_v63 = vmul.f32 0.35355338, %v2313_v59 }
 0x19f   :  { %v190_v60 = vpop.f32.mrf.mxu0 }
 0x1a0   :  { %v2317_v61 = vadd.f32 %v2017_v57, %v190_v60 }
 0x1a2   :  { %356 = vrot.lane.b32.xlu0 %v2317_v61, %s2155_s18  ;;  %225 = vrot.lane.b32.xlu2 %v2317_v61, %s2154_s30  ;;  %v194_v62 = vmul.f32 0.35355338, %v2317_v61  ;;  %v1995_v33 = vpack.i.bf16 %v2317_v61, %v2313_v59 }
 0x1a4   :  { %354 = vrot.lane.b32.xlu1 %v194_v62, %s2156_s11 }
 0x1aa   :  { %456 = vrot.lane.b32.xlu0 %v193_v63, %s2157_s19  ;;  %328 = vrot.lane.b32.xlu2 %v2313_v59, %s2155_s18 }
 0x1ac   :  { %586 = vrot.lane.b32.xlu1 %v193_v63, %s2846_s1 }
 0x1b2   :  { %486 = vrot.lane.b32.xlu0 %v2317_v61, %s2852_s20  ;;  %458 = vrot.lane.b32.xlu2 %v2313_v59, %s2852_s20 }
 0x1b4   :  { %616 = vrot.lane.b32.xlu1 %v2317_v61, %s2848_s21 }
 0x1ba   :  { %326 = vrot.lane.b32.xlu2 %v193_v63, %s2156_s11  ;;  %614 = vrot.lane.b32.xlu0 %v194_v62, %s2846_s1 }
 0x1c2   :  { %588 = vrot.lane.b32.xlu2 %v2313_v59, %s2848_s21  ;;  %s1863_s21 = sshll.u32 %s2840_s17, 4  ;;  %s1864_s21 = int_to_ptr.hbm [resolvable:$true] %s1863_s21 }
 0x1ca   :  { %484 = vrot.lane.b32.xlu2 %v194_v62, %s2157_s19 }
 0x1f4   :  { %v197_v0 = vpop.permute.xlu2 %196 }
 0x1f5   :  { %1877 = vmatpush.xpose.msk.msra.mxu2 %vm198_vm8, %v197_v0 }
 0x1f8   :  { %1878 = vmatmul.msk.f32.vlgmr.msra.gmra.mxu2 %vm198_vm8, %v193_v63 }
 0x1fc   :  { %v226_v1 = vpop.permute.xlu2 %225 }
 0x1fd   :  { %1879 = vmatpush.xpose.msk.msrb.mxu2 %vm198_vm8, %v226_v1 }
 0x200   :  { %1880 = vmatmul.msk.f32.vlgmr.msrb.gmra.mxu2 %vm198_vm8, %v194_v62 }
 0x204   :  { %v329_v2 = vpop.permute.xlu2 %328 }
 0x205   :  { %1883 = vmatpush.xpose.msk.msra.mxu1 %vm198_vm8, %v329_v2 }
 0x20c   :  { %v459_v4 = vpop.permute.xlu2 %458 }
 0x214   :  { %v357_v5 = vpop.permute.xlu0 %356  ;;  %v327_v7 = vpop.permute.xlu2 %326 }
 0x215   :  { %1884 = vmatmul.msk.f32.vlgmr.msra.gmra.mxu1 %vm198_vm8, %v327_v7  ;;  %1885 = vmatpush.xpose.msk.msra.mxu2 %vm198_vm8, %v357_v5 }
 0x216   :  { %v355_v8 = vpop.permute.xlu1 %354 }
 0x218   :  { %1886 = vmatmul.msk.f32.vlgmr.msra.gmra.mxu2 %vm198_vm8, %v355_v8 }
 0x219   :  { %1889 = vmatpush.xpose.msk.msrb.mxu2 %vm198_vm8, %v459_v4 }
 0x21c   :  { %v457_v9 = vpop.permute.xlu0 %456  ;;  %v589_v10 = vpop.permute.xlu2 %588 }
 0x21d   :  { %1895 = vmatpush.xpose.msk.msra.mxu2 %vm198_vm8, %v589_v10 }
 0x21e   :  { %v587_v11 = vpop.permute.xlu1 %586 }
 0x220   :  { %1890 = vmatmul.msk.f32.vlgmr.msrb.gmra.mxu2 %vm198_vm8, %v457_v9 }
 0x224   :  { %v487_v12 = vpop.permute.xlu0 %486  ;;  %v485_v15 = vpop.permute.xlu2 %484 }
 0x225   :  { %1891 = vmatpush.xpose.msk.msrb.mxu0 %vm198_vm8, %v487_v12 }
 0x226   :  { %v617_v13 = vpop.permute.xlu1 %616 }
 0x228   :  { %1892 = vmatmul.msk.f32.vlgmr.msrb.gmra.mxu0 %vm198_vm8, %v485_v15  ;;  %1896 = vmatmul.msk.f32.vlgmr.msra.gmra.mxu2 %vm198_vm8, %v587_v11 }
 0x229   :  { %1897 = vmatpush.xpose.msk.msra.mxu0 %vm198_vm8, %v617_v13 }
 0x22c   :  { %v615_v16 = vpop.permute.xlu0 %614 }
 0x230   :  { %1898 = vmatmul.msk.f32.vlgmr.msra.gmra.mxu0 %vm198_vm8, %v615_v16 }
 0x27b   :  { %v221_v17 = vpop.f32.mrf.mxu2 }
 0x27c   :  { %v252_v18 = vsel %vm198_vm8, %v221_v17, -inf }
 0x27d   :  { %253 = vmax.xlane.f32.xlu2 %v252_v18 }
 0x283   :  { %v249_v19 = vpop.f32.mrf.mxu2 }
 0x284   :  { %v255_v20 = vsel %vm198_vm8, %v249_v19, -inf }
 0x285   :  { %256 = vmax.xlane.f32.xlu1 %v255_v20 }
 0x292   :  { %v351_v21 = vpop.f32.mrf.mxu1 }
 0x293   :  { %v382_v22 = vsel %vm198_vm8, %v351_v21, -inf }
 0x294   :  { %383 = vmax.xlane.f32.xlu0 %v382_v22 }
 0x29b   :  { %v379_v23 = vpop.f32.mrf.mxu2 }
 0x29c   :  { %v385_v32 = vsel %vm198_vm8, %v379_v23, -inf }
 0x2a3   :  { %v2360_v24 = vpop.f32.mrf.mxu2 }
 0x2a4   :  { %v512_v30 = vsel %vm198_vm8, %v2360_v24, -inf }
 0x2a5   :  { %v509_v25 = vpop.f32.mrf.mxu0 }
 0x2a6   :  { %v515_v26 = vsel %vm198_vm8, %v509_v25, -inf }
 0x2a7   :  { %516 = vmax.xlane.f32.xlu2 %v515_v26 }
 0x2ab   :  { %v2363_v27 = vpop.f32.mrf.mxu2 }
 0x2ac   :  { %v642_v28 = vsel %vm198_vm8, %v2363_v27, -inf }
 0x2ad   :  { %v639_v29 = vpop.f32.mrf.mxu0  ;;  %643 = vmax.xlane.f32.xlu0 %v642_v28 }
 0x2ae   :  { %v645_v31 = vsel %vm198_vm8, %v639_v29, -inf }
 0x2af   :  { %513 = vmax.xlane.f32.xlu2 %v512_v30  ;;  %646 = vmax.xlane.f32.xlu1 %v645_v31 }
 0x2b7   :  { %386 = vmax.xlane.f32.xlu1 %v385_v32 }
 0x2c1   :  { %1996 = vrot.lane.b32.xlu0 %v1995_v33, %s2161_s22 }
 0x2d0   :  { %1991 = vrot.lane.b32.xlu1 %v1995_v33, %s2162_s23 }
 0x2d8   :  { %534 = vrot.lane.b32.xlu1 %v2313_v59, %s2844_s24 }
 0x2f0   :  { %v254_v34 = vpop.xlane.xlu2 %253 }
 0x2f1   :  { %v258_v37 = vsub.f32 %v221_v17, %v254_v34 }
 0x2f3   :  { %v260_v39 = vmul.f32 1.442695, %v258_v37 }
 0x2f8   :  { %v257_v43 = vpop.xlane.xlu1 %256 }
 0x2f9   :  { %v259_v47 = vsub.f32 %v249_v19, %v257_v43 }
 0x2fb   :  { %v262_v49 = vmul.f32 1.442695, %v259_v47 }
 0x307   :  { %v384_v35 = vpop.xlane.xlu0 %383 }
 0x308   :  { %v388_v36 = vsub.f32 %v351_v21, %v384_v35 }
 0x30a   :  { %v390_v38 = vmul.f32 1.442695, %v388_v36 }
 0x30c   :  { %2039 = vpow2.f32 %v390_v38 }
 0x30d   :  { %2041 = vpow2.f32 %v260_v39 }
 0x312   :  { %v2377_v40 = vpop.eup %2039 }
 0x313   :  { %v394_v41 = vsel %vm198_vm8, %v2377_v40, 0.0  ;;  %v2042_v42 = vpop.eup %2041 }
 0x314   :  { %395 = vadd.xlane.f32.xlu0 %v394_v41  ;;  %v264_v46 = vsel %vm198_vm8, %v2042_v42, 0.0 }
 0x31a   :  { %v517_v44 = vpop.xlane.xlu2 %516 }
 0x31b   :  { %v519_v45 = vsub.f32 %v509_v25, %v517_v44 }
 0x31c   :  { %265 = vadd.xlane.f32.xlu0 %v264_v46 }
 0x31d   :  { %v522_v48 = vmul.f32 1.442695, %v519_v45 }
 0x31f   :  { %2043 = vpow2.f32 %v522_v48 }
 0x320   :  { %2045 = vpow2.f32 %v262_v49  ;;  %v644_v58 = vpop.xlane.xlu0 %643 }
 0x321   :  { %v648_v9 = vsub.f32 %v2363_v27, %v644_v58  ;;  %v70_v58 = vld [vmem:[%s2829_s6] sm:$0xff] }
 0x322   :  { %v647_v50 = vpop.xlane.xlu1 %646  ;;  %v514_v55 = vpop.xlane.xlu2 %513 }
 0x323   :  { %v649_v51 = vsub.f32 %v639_v29, %v647_v50  ;;  %v518_v62 = vsub.f32 %v2360_v24, %v514_v55  ;;  %v650_v11 = vmul.f32 1.442695, %v648_v9  ;;  %v73_v55 = vld [vmem:[%s2829_s6 + $0x18] sm:$0xff] }
 0x324   :  { %769 = vmatpush.msrb.mxu2 %v73_v55 }
 0x325   :  { %v2382_v52 = vpop.eup %2043  ;;  %v652_v53 = vmul.f32 1.442695, %v649_v51  ;;  %v520_v4 = vmul.f32 1.442695, %v518_v62 }
 0x326   :  { %v527_v54 = vsel %vm198_vm8, %v2382_v52, 0.0  ;;  %v2046_v57 = vpop.eup %2045 }
 0x327   :  { %528 = vadd.xlane.f32.xlu2 %v527_v54  ;;  %2047 = vpow2.f32 %v652_v53  ;;  %v267_v1 = vsel %vm198_vm8, %v2046_v57, 0.0 }
 0x32a   :  { %v387_v56 = vpop.xlane.xlu1 %386 }
 0x32b   :  { %v389_v60 = vsub.f32 %v379_v23, %v387_v56  ;;  %v72_v56 = vld [vmem:[%s2829_s6 + $0x10] sm:$0xff] }
 0x32c   :  { %770 = vmatpush.msrb.mxu2 %v72_v56 }
 0x32d   :  { %v392_v63 = vmul.f32 1.442695, %v389_v60  ;;  %v2387_v0 = vpop.eup %2047 }
 0x32e   :  { %v657_v2 = vsel %vm198_vm8, %v2387_v0, 0.0 }
 0x32f   :  { %2049 = vpow2.f32 %v392_v63  ;;  %268 = vadd.xlane.f32.xlu2 %v267_v1  ;;  %658 = vadd.xlane.f32.xlu1 %v657_v2 }
 0x330   :  { %664 = vrot.lane.b32.xlu0 %v2313_v59, %s2845_s25  ;;  %2051 = vpow2.f32 %v520_v4 }
 0x331   :  { %2053 = vpow2.f32 %v650_v11  ;;  %v2018_v11 = vld [vmem:[%s2830_s7] ss:$0 sm:$0xff] }
 0x333   :  { %v1997_v5 = vpop.permute.xlu0 %1996 }
 0x334   :  { %v1999_v7 = vunpack.i.h.bf16 %v1997_v5  ;;  %v1998_v23 = vunpack.i.l.bf16 %v1997_v5 }
 0x335   :  { %v2050_v8 = vpop.eup %2049 }
 0x336   :  { %451 = vmatpush.msrb.mxu1 %v1999_v7  ;;  %v397_v10 = vsel %vm198_vm8, %v2050_v8, 0.0  ;;  %v2052_v12 = vpop.eup %2051 }
 0x337   :  { %398 = vadd.xlane.f32.xlu2 %v397_v10  ;;  %v524_v13 = vsel %vm198_vm8, %v2052_v12, 0.0  ;;  %v2054_v15 = vpop.eup %2053 }
 0x338   :  { %690 = vrot.lane.b32.xlu0 %v2317_v61, %s2845_s25  ;;  %v654_v18 = vsel %vm198_vm8, %v2054_v15, 0.0 }
 0x33f   :  { %525 = vadd.xlane.f32.xlu2 %v524_v13 }
 0x342   :  { %v1992_v59 = vpop.permute.xlu1 %1991 }
 0x343   :  { %v1993_v16 = vunpack.i.l.bf16 %v1992_v59  ;;  %v1994_v17 = vunpack.i.h.bf16 %v1992_v59 }
 0x345   :  { %295 = vmatpush.msra.mxu3 %v1993_v16 }
 0x347   :  { %321 = vmatpush.msrb.mxu3 %v1994_v17  ;;  %655 = vadd.xlane.f32.xlu2 %v654_v18 }
 0x34a   :  { %v535_v29 = vpop.permute.xlu1 %534 }
 0x35f   :  { %560 = vrot.lane.b32.xlu2 %v2317_v61, %s2844_s24  ;;  %s2169_s24 = smov 128  }
 0x387   :  { %v396_v19 = vpop.xlane.xlu0 %395 }
 0x38f   :  { %v266_v20 = vpop.xlane.xlu0 %265 }
 0x390   :  { %2055 = vrcp.f32 %v266_v20 }
 0x396   :  { %v2056_v21 = vpop.eup %2055 }
 0x397   :  { %v272_v22 = vmul.f32 %v2056_v21, %v2042_v42 }
 0x399   :  { %1881 = vmatmul.msk.f32.vlgmr.msra.gmra.mxu3 %vm198_vm8, %v272_v22 }
 0x39a   :  { %425 = vmatpush.msra.mxu3 %v1998_v23  ;;  %v529_v24 = vpop.xlane.xlu2 %528 }
 0x3a2   :  { %v269_v25 = vpop.xlane.xlu2 %268  ;;  %v665_v34 = vpop.permute.xlu0 %664 }
 0x3a3   :  { %2057 = vrcp.f32 %v269_v25  ;;  %v659_v38 = vpop.xlane.xlu1 %658 }
 0x3a4   :  { %2059 = vrcp.f32 %v396_v19 }
 0x3a9   :  { %v2058_v26 = vpop.eup %2057 }
 0x3aa   :  { %v399_v27 = vpop.xlane.xlu2 %398  ;;  %v273_v28 = vmul.f32 %v2058_v26, %v2046_v57  ;;  %v2060_v61 = vpop.eup %2059  ;;  %v71_v57 = vld [vmem:[%s2829_s6 + $0x8] sm:$0xff] }
 0x3ab   :  { %2061 = vrcp.f32 %v399_v27  ;;  %v402_v31 = vmul.f32 %v2060_v61, %v2377_v40  ;;  %v691_v44 = vpop.permute.xlu0 %690  ;;  %771 = vmatpush.msrb.mxu2 %v71_v57  ;;  %v78_v61 = vld [vmem:[%s2833_s10 + $0x8] sm:$0xff] }
 0x3ac   :  { %1882 = vmatmul.msk.f32.vlgmr.msrb.gmra.mxu3 %vm198_vm8, %v273_v28  ;;  %v80_v28 = vld [vmem:[%s2833_s10 + $0x18] sm:$0xff] }
 0x3ad   :  { %555 = vmatpush.msrb.mxu3 %v535_v29  ;;  %772 = vmatpush.msrb.mxu2 %v70_v58  ;;  %v79_v29 = vld [vmem:[%s2833_s10 + $0x10] sm:$0xff] }
 0x3b1   :  { %v2062_v30 = vpop.eup %2061 }
 0x3b2   :  { %v526_v32 = vpop.xlane.xlu2 %525  ;;  %v403_v33 = vmul.f32 %v2062_v30, %v2050_v8  ;;  %v77_v30 = vld [vmem:[%s2833_s10] sm:$0xff] }
 0x3b3   :  { %2063 = vrcp.f32 %v526_v32 }
 0x3b4   :  { %1887 = vmatmul.msk.f32.vlgmr.msra.gmra.mxu3 %vm198_vm8, %v402_v31  ;;  %1888 = vmatmul.msk.f32.vlgmr.msrb.gmra.mxu1 %vm198_vm8, %v403_v33  ;;  %2065 = vrcp.f32 %v529_v24 }
 0x3b5   :  { %685 = vmatpush.msra.mxu3 %v665_v34 }
 0x3b9   :  { %v2064_v35 = vpop.eup %2063 }
 0x3ba   :  { %v532_v36 = vmul.f32 %v2064_v35, %v2052_v12  ;;  %v656_v37 = vpop.xlane.xlu2 %655  ;;  %v2066_v39 = vpop.eup %2065 }
 0x3bb   :  { %2067 = vrcp.f32 %v656_v37  ;;  %v533_v40 = vmul.f32 %v2066_v39, %v2382_v52  ;;  %v96_v37 = vld [vmem:[%s2835_s12 + $0x70] sm:$0xff]  ;;  %v95_v39 = vld [vmem:[%s2835_s12 + $0x68] sm:$0xff] }
 0x3bc   :  { %1893 = vmatmul.msk.f32.vlgmr.msrb.gmra.mxu3 %vm198_vm8, %v532_v36  ;;  %2069 = vrcp.f32 %v659_v38  ;;  %v97_v36 = vld [vmem:[%s2835_s12 + $0x78] sm:$0xff] }
 0x3bd   :  { %889 = vmatpush.msrb.mxu3 %v97_v36 }
 0x3bf   :  { %890 = vmatpush.msrb.mxu3 %v96_v37  ;;  %v2022_v37 = vld [vmem:[%s2836_s13] ss:$0 sm:$0xff] }
 0x3c1   :  { %v2068_v41 = vpop.eup %2067  ;;  %891 = vmatpush.msrb.mxu3 %v95_v39 }
 0x3c2   :  { %v662_v42 = vmul.f32 %v2068_v41, %v2054_v15  ;;  %v561_v43 = vpop.permute.xlu2 %560  ;;  %v2070_v45 = vpop.eup %2069 }
 0x3c3   :  { %581 = vmatpush.msra.mxu1 %v561_v43  ;;  %v663_v46 = vmul.f32 %v2070_v45, %v2387_v0 }
 0x3c4   :  { %1894 = vmatmul.msk.f32.vlgmr.msra.gmra.mxu1 %vm198_vm8, %v533_v40  ;;  %1899 = vmatmul.msk.f32.vlgmr.msra.gmra.mxu3 %vm198_vm8, %v662_v42 }
 0x3c5   :  { %711 = vmatpush.msrb.mxu1 %v691_v44 }
 0x3c7   :  { %857 = vmatpush.msra.mxu1 %v80_v28 }
 0x3c9   :  { %858 = vmatpush.msra.mxu1 %v79_v29 }
 0x3cb   :  { %859 = vmatpush.msra.mxu1 %v78_v61 }
 0x3cc   :  { %1900 = vmatmul.msk.f32.vlgmr.msrb.gmra.mxu1 %vm198_vm8, %v663_v46  ;;  %v2019_v46 = vld [vmem:[%s2831_s8] ss:$0 sm:$0xff] }
 0x3cd   :  { %860 = vmatpush.msra.mxu1 %v77_v30 }
 0x41c   :  { %v297_v47 = vpop.f32.mrf.mxu3 }
 0x42f   :  { %v323_v48 = vpop.f32.mrf.mxu3 }
 0x431   :  { %v453_v50 = vpop.f32.mrf.mxu1 }
 0x437   :  { %v427_v49 = vpop.f32.mrf.mxu3 }
 0x438   :  { %718 = vrot.lane.b32.xlu0 %v427_v49, %s2850_s26  ;;  %v2020_v49 = vld [vmem:[%s2832_s9] ss:$0 sm:$0xff] }
 0x43f   :  { %v557_v51 = vpop.f32.mrf.mxu3 }
 0x440   :  { %726 = vrot.lane.b32.xlu0 %v557_v51, %s2856_s27 }
 0x441   :  { %v583_v52 = vpop.f32.mrf.mxu1 }
 0x447   :  { %v687_v53 = vpop.f32.mrf.mxu3 }
 0x448   :  { %720 = vrot.lane.b32.xlu0 %v453_v50, %s2850_s26  ;;  %734 = vrot.lane.b32.xlu2 %v687_v53, %s2854_s28 }
 0x449   :  { %v713_v54 = vpop.f32.mrf.mxu1 }
 0x450   :  { %736 = vrot.lane.b32.xlu0 %v713_v54, %s2854_s28  ;;  %728 = vrot.lane.b32.xlu2 %v583_v52, %s2856_s27  ;;  %s2863_s27 = sld [smem:[#allocation7_spill]] }
 0x4a2   :  { %v735_v0 = vpop.permute.xlu2 %734 }
 0x4aa   :  { %v719_v60 = vpop.permute.xlu0 %718  ;;  %v729_v7 = vpop.permute.xlu2 %728 }
 0x4ab   :  { %v740_v62 = vsel %vm198_vm8, %v297_v47, %v719_v60 }
 0x4b2   :  { %v727_v63 = vpop.permute.xlu0 %726 }
 0x4b3   :  { %v743_v1 = vsel %vm742_vm9, %v740_v62, %v727_v63 }
 0x4b4   :  { %v746_v2 = vsel %vm745_vm10, %v743_v1, %v735_v0  ;;  %v94_v0 = vld [vmem:[%s2835_s12 + $0x60] sm:$0xff]  ;;  %v93_v1 = vld [vmem:[%s2835_s12 + $0x58] sm:$0xff] }
 0x4b5   :  { %1901 = vmatmul.msk.f32.vlgmr.msrb.gmra.mxu2 %vm99_vm0, %v746_v2  ;;  %892 = vmatpush.msrb.mxu3 %v94_v0  ;;  %v92_v2 = vld [vmem:[%s2835_s12 + $0x50] sm:$0xff] }
 0x4b7   :  { %893 = vmatpush.msrb.mxu3 %v93_v1 }
 0x4b9   :  { %894 = vmatpush.msrb.mxu3 %v92_v2 }
 0x4ba   :  { %v721_v4 = vpop.permute.xlu0 %720 }
 0x4bb   :  { %v741_v5 = vsel %vm198_vm8, %v323_v48, %v721_v4  ;;  %v91_v4 = vld [vmem:[%s2835_s12 + $0x48] sm:$0xff] }
 0x4bc   :  { %v744_v9 = vsel %vm742_vm9, %v741_v5, %v729_v7  ;;  %895 = vmatpush.msrb.mxu3 %v91_v4  ;;  %v90_v5 = vld [vmem:[%s2835_s12 + $0x40] sm:$0xff]  ;;  %v89_v7 = vld [vmem:[%s2835_s12 + $0x38] sm:$0xff] }
 0x4be   :  { %896 = vmatpush.msrb.mxu3 %v90_v5 }
 0x4c0   :  { %897 = vmatpush.msrb.mxu3 %v89_v7 }
 0x4c2   :  { %v737_v8 = vpop.permute.xlu0 %736 }
 0x4c3   :  { %v747_v10 = vsel %vm745_vm10, %v744_v9, %v737_v8  ;;  %v88_v8 = vld [vmem:[%s2835_s12 + $0x30] sm:$0xff]  ;;  %v87_v9 = vld [vmem:[%s2835_s12 + $0x28] sm:$0xff] }
 0x4c4   :  { %1902 = vmatmul.msk.f32.gmra.mxu2 %vm99_vm0, %v747_v10  ;;  %898 = vmatpush.msrb.mxu3 %v88_v8  ;;  %v86_v10 = vld [vmem:[%s2835_s12 + $0x20] sm:$0xff] }
 0x4c6   :  { %899 = vmatpush.msrb.mxu3 %v87_v9 }
 0x4c8   :  { %900 = vmatpush.msrb.mxu3 %v86_v10  ;;  %v2023_v10 = vld [vmem:[%s2825_s2 + $0x1] ss:$0 sm:$0xff] }
 0x538   :  { %v774_v12 = vpop.f32.mrf.mxu2 }
 0x539   :  { %v775_v13 = vadd.f32 %v2018_v11, %v774_v12  ;;  %v84_v12 = vld [vmem:[%s2835_s12 + $0x10] sm:$0xff] }
 0x53b   :  { %v2443_v59 = vadd.f32 %v775_v13, %v2269_v3  ;;  %v83_v13 = vld [vmem:[%s2835_s12 + $0x8] sm:$0xff] }
 0x53d   :  { %v782_v15 = vsel %vm99_vm0, %v2443_v59, 0.0 }
 0x53e   :  { %783 = vadd.xlane.f32.xlu1 %v782_v15  ;;  %v82_v15 = vld [vmem:[%s2835_s12] sm:$0xff] }
 0x547   :  { %v777_v16 = vpop.f32.mrf.mxu2 }
 0x548   :  { %v778_v17 = vadd.f32 %v2018_v11, %v777_v16  ;;  %v85_v11 = vld [vmem:[%s2835_s12 + $0x18] sm:$0xff]  ;;  %v2021_v16 = vld [vmem:[%s2863_s27] ss:$0 sm:$0xff] }
 0x549   :  { %901 = vmatpush.msrb.mxu3 %v85_v11 }
 0x54a   :  { %v2448_v18 = vadd.f32 %v778_v17, %v2276_v6 }
 0x54b   :  { %902 = vmatpush.msrb.mxu3 %v84_v12 }
 0x54c   :  { %v785_v19 = vsel %vm99_vm0, %v2448_v18, 0.0 }
 0x54d   :  { %786 = vadd.xlane.f32.xlu2 %v785_v19  ;;  %903 = vmatpush.msrb.mxu3 %v83_v13  ;;  %v2024_v13 = vld [vmem:[%s2826_s3 + $0x1] ss:$0 sm:$0xff] }
 0x54f   :  { %904 = vmatpush.msrb.mxu3 %v82_v15 }
 0x5b1   :  { %v784_v20 = vpop.xlane.xlu1 %783 }
 0x5b2   :  { %v788_v21 = vmul.f32 %v784_v20, %v2280_v14 }
 0x5b4   :  { %v790_v22 = vsub.f32 %v2443_v59, %v788_v21 }
 0x5b6   :  { %v792_v3 = vmul.f32 %v790_v22, %v790_v22 }
 0x5b8   :  { %v794_v23 = vsel %vm99_vm0, %v792_v3, 0.0 }
 0x5b9   :  { %795 = vadd.xlane.f32.xlu0 %v794_v23 }
 0x5c0   :  { %v787_v24 = vpop.xlane.xlu2 %786 }
 0x5c1   :  { %v789_v25 = vmul.f32 %v787_v24, %v2280_v14 }
 0x5c3   :  { %v791_v26 = vsub.f32 %v2448_v18, %v789_v25 }
 0x5c5   :  { %v793_v6 = vmul.f32 %v791_v26, %v791_v26 }
 0x5c7   :  { %v797_v27 = vsel %vm99_vm0, %v793_v6, 0.0 }
 0x5c8   :  { %798 = vadd.xlane.f32.xlu1 %v797_v27 }
 0x62c   :  { %v796_v31 = vpop.xlane.xlu0 %795 }
 0x62d   :  { %v800_v32 = vmul.f32 %v796_v31, %v2280_v14 }
 0x62f   :  { %v802_v33 = vadd.f32 1e-05, %v800_v32 }
 0x631   :  { %2071 = vrsqrt.f32 %v802_v33  ;;  %vm810_vm12 = vweird.f32 %v802_v33 }
 0x637   :  { %v2072_v34 = vpop.eup %2071 }
 0x638   :  { %v805_v35 = vmul.f32 %v2072_v34, %v802_v33  ;;  %vm811_vm11 = vweird.f32 %v2072_v34 }
 0x639   :  { %vm812_vm13 = vmor %vm810_vm12, %vm811_vm11 }
 0x63a   :  { %v806_v38 = vmul.f32 %v2072_v34, %v805_v35 }
 0x63b   :  { %v799_v41 = vpop.xlane.xlu1 %798 }
 0x63c   :  { %v807_v40 = vmul.f32 0.5, %v806_v38  ;;  %v801_v42 = vmul.f32 %v799_v41, %v2280_v14 }
 0x63e   :  { %v808_v43 = vsub.f32 1.5, %v807_v40  ;;  %v803_v44 = vadd.f32 1e-05, %v801_v42 }
 0x640   :  { %v809_v45 = vmul.f32 %v2072_v34, %v808_v43  ;;  %2073 = vrsqrt.f32 %v803_v44  ;;  %vm820_vm15 = vweird.f32 %v803_v44 }
 0x642   :  { %v813_v47 = vsel %vm812_vm13, %v2072_v34, %v809_v45 }
 0x643   :  { %v824_v48 = vmul.f32 %v813_v47, %v790_v22 }
 0x645   :  { %v829_v50 = vmul.f32 %v2019_v46, %v824_v48 }
 0x646   :  { %v2074_v51 = vpop.eup %2073 }
 0x647   :  { %v815_v52 = vmul.f32 %v2074_v51, %v803_v44  ;;  %v834_v53 = vadd.f32 %v2020_v49, %v829_v50  ;;  %vm821_vm14 = vweird.f32 %v2074_v51 }
 0x648   :  { %vm822_vm1 = vmor %vm820_vm15, %vm821_vm14 }
 0x649   :  { %v816_v54 = vmul.f32 %v2074_v51, %v815_v52  ;;  %1903 = vmatmul.msk.f32.vlgmr.msra.gmra.mxu1 %vm99_vm0, %v834_v53 }
 0x64b   :  { %v817_v55 = vmul.f32 0.5, %v816_v54  ;;  %v1910_v54 = vld [vmem:[%s2827_s4 + $0x38] sm:$0xff] }
 0x64c   :  { %1037 = vmatpush.msrb.mxu1 %v1910_v54 }
 0x64d   :  { %v818_v56 = vsub.f32 1.5, %v817_v55  ;;  %v1909_v55 = vld [vmem:[%s2827_s4 + $0x30] sm:$0xff] }
 0x64e   :  { %1038 = vmatpush.msrb.mxu1 %v1909_v55 }
 0x64f   :  { %v819_v57 = vmul.f32 %v2074_v51, %v818_v56  ;;  %v1908_v56 = vld [vmem:[%s2827_s4 + $0x28] sm:$0xff] }
 0x650   :  { %1039 = vmatpush.msrb.mxu1 %v1908_v56 }
 0x651   :  { %v823_v58 = vsel %vm822_vm1, %v2074_v51, %v819_v57  ;;  %v1907_v57 = vld [vmem:[%s2827_s4 + $0x20] sm:$0xff] }
 0x652   :  { %v825_v60 = vmul.f32 %v823_v58, %v791_v26  ;;  %1040 = vmatpush.msrb.mxu1 %v1907_v57 }
 0x654   :  { %v830_v62 = vmul.f32 %v2019_v46, %v825_v60 }
 0x656   :  { %v835_v63 = vadd.f32 %v2020_v49, %v830_v62 }
 0x658   :  { %1904 = vmatmul.msk.f32.gmra.mxu1 %vm99_vm0, %v835_v63 }
 0x6c6   :  { %v862_v17 = vpop.f32.mrf.mxu1 }
 0x6c7   :  { %v863_v19 = vadd.f32 %v2021_v16, %v862_v17 }
 0x6c9   :  { %v868_v20 = vmul.f32 %v863_v19, %v863_v19 }
 0x6cb   :  { %v870_v21 = vmul.f32 %v868_v20, %v863_v19 }
 0x6cd   :  { %v872_v22 = vmul.f32 0.044715, %v870_v21 }
 0x6cf   :  { %v874_v3 = vadd.f32 %v872_v22, %v863_v19 }
 0x6d1   :  { %v876_v23 = vmul.f32 0.7978846, %v874_v3 }
 0x6d3   :  { %2075 = vtanh.f32 %v876_v23 }
 0x6d5   :  { %v865_v24 = vpop.f32.mrf.mxu1 }
 0x6d6   :  { %v866_v25 = vadd.f32 %v2021_v16, %v865_v24 }
 0x6d8   :  { %v869_v26 = vmul.f32 %v866_v25, %v866_v25 }
 0x6d9   :  { %v2076_v6 = vpop.eup %2075 }
 0x6da   :  { %v871_v27 = vmul.f32 %v869_v26, %v866_v25  ;;  %v880_v28 = vadd.f32 1.0, %v2076_v6  ;;  %v2025_v6 = vld [vmem:[%s2828_s5 + $0x1] ss:$0 sm:$0xff]  ;;  %s2864_s5 = smov 80  }
 0x6dc   :  { %v882_v29 = vmul.f32 0.5, %v880_v28  ;;  %v873_v61 = vmul.f32 0.044715, %v871_v27 }
 0x6de   :  { %v884_v30 = vmul.f32 %v882_v29, %v863_v19  ;;  %v875_v31 = vadd.f32 %v873_v61, %v866_v25 }
 0x6e0   :  { %905 = vmatmul.f32.vlgmr.msrb.gmra.mxu3 %v884_v30  ;;  %v877_v32 = vmul.f32 0.7978846, %v875_v31 }
 0x6e2   :  { %2077 = vtanh.f32 %v877_v32 }
 0x6e8   :  { %v2078_v33 = vpop.eup %2077 }
 0x6e9   :  { %v881_v34 = vadd.f32 1.0, %v2078_v33 }
 0x6eb   :  { %v883_v35 = vmul.f32 0.5, %v881_v34 }
 0x6ed   :  { %v885_v36 = vmul.f32 %v883_v35, %v866_v25 }
 0x6ef   :  { %908 = vmatmul.f32.gmra.mxu3 %v885_v36 }
 0x763   :  { %v906_v38 = vpop.f32.mrf.mxu3 }
 0x764   :  { %v907_v39 = vadd.f32 %v2022_v37, %v906_v38 }
 0x766   :  { %v2535_v41 = vadd.f32 %v907_v39, %v2443_v59 }
 0x768   :  { %v962_v40 = vsel %vm99_vm0, %v2535_v41, 0.0 }
 0x769   :  { %963 = vadd.xlane.f32.xlu1 %v962_v40 }
 0x772   :  { %v909_v42 = vpop.f32.mrf.mxu3 }
 0x773   :  { %v910_v43 = vadd.f32 %v2022_v37, %v909_v42 }
 0x775   :  { %v2540_v44 = vadd.f32 %v910_v43, %v2448_v18 }
 0x777   :  { %v965_v45 = vsel %vm99_vm0, %v2540_v44, 0.0 }
 0x778   :  { %966 = vadd.xlane.f32.xlu1 %v965_v45 }
 0x7dc   :  { %v964_v46 = vpop.xlane.xlu1 %963 }
 0x7dd   :  { %v968_v47 = vmul.f32 %v964_v46, %v2280_v14 }
 0x7df   :  { %v970_v48 = vsub.f32 %v2535_v41, %v968_v47 }
 0x7e1   :  { %v972_v59 = vmul.f32 %v970_v48, %v970_v48 }
 0x7e3   :  { %v974_v49 = vsel %vm99_vm0, %v972_v59, 0.0 }
 0x7e4   :  { %975 = vadd.xlane.f32.xlu1 %v974_v49 }
 0x7eb   :  { %v967_v50 = vpop.xlane.xlu1 %966 }
 0x7ec   :  { %v969_v51 = vmul.f32 %v967_v50, %v2280_v14 }
 0x7ee   :  { %v971_v52 = vsub.f32 %v2540_v44, %v969_v51 }
 0x7f0   :  { %v973_v18 = vmul.f32 %v971_v52, %v971_v52 }
 0x7f2   :  { %v977_v53 = vsel %vm99_vm0, %v973_v18, 0.0 }
 0x7f3   :  { %978 = vadd.xlane.f32.xlu1 %v977_v53 }
 0x857   :  { %v976_v58 = vpop.xlane.xlu1 %975 }
 0x858   :  { %v980_v60 = vmul.f32 %v976_v58, %v2280_v14 }
 0x85a   :  { %v982_v62 = vadd.f32 1e-05, %v980_v60 }
 0x85c   :  { %2079 = vrsqrt.f32 %v982_v62  ;;  %vm990_vm3 = vweird.f32 %v982_v62 }
 0x862   :  { %v2080_v63 = vpop.eup %2079 }
 0x863   :  { %v985_v0 = vmul.f32 %v2080_v63, %v982_v62  ;;  %vm991_vm2 = vweird.f32 %v2080_v63 }
 0x864   :  { %vm992_vm4 = vmor %vm990_vm3, %vm991_vm2 }
 0x865   :  { %v986_v1 = vmul.f32 %v2080_v63, %v985_v0 }
 0x866   :  { %v979_v2 = vpop.xlane.xlu1 %978 }
 0x867   :  { %v987_v4 = vmul.f32 0.5, %v986_v1  ;;  %v981_v5 = vmul.f32 %v979_v2, %v2280_v14 }
 0x869   :  { %v988_v7 = vsub.f32 1.5, %v987_v4  ;;  %v983_v8 = vadd.f32 1e-05, %v981_v5 }
 0x86b   :  { %v989_v9 = vmul.f32 %v2080_v63, %v988_v7  ;;  %2081 = vrsqrt.f32 %v983_v8  ;;  %vm1000_vm6 = vweird.f32 %v983_v8 }
 0x86d   :  { %v993_v11 = vsel %vm992_vm4, %v2080_v63, %v989_v9 }
 0x86e   :  { %v1004_v12 = vmul.f32 %v993_v11, %v970_v48 }
 0x870   :  { %v1009_v15 = vmul.f32 %v2023_v10, %v1004_v12 }
 0x871   :  { %v2082_v16 = vpop.eup %2081 }
 0x872   :  { %v995_v17 = vmul.f32 %v2082_v16, %v983_v8  ;;  %v1014_v19 = vadd.f32 %v2024_v13, %v1009_v15  ;;  %vm1001_vm5 = vweird.f32 %v2082_v16 }
 0x873   :  { %vm1002_vm7 = vmor %vm1000_vm6, %vm1001_vm5 }
 0x874   :  { %v996_v20 = vmul.f32 %v2082_v16, %v995_v17  ;;  %1941 = vmatmul.msk.f32.vlgmr.msrb.gmra.mxu1 %vm99_vm0, %v1014_v19 }
 0x876   :  { %v997_v21 = vmul.f32 0.5, %v996_v20 }
 0x878   :  { %v998_v22 = vsub.f32 1.5, %v997_v21 }
 0x87a   :  { %v999_v3 = vmul.f32 %v2082_v16, %v998_v22 }
 0x87c   :  { %v1003_v23 = vsel %vm1002_vm7, %v2082_v16, %v999_v3 }
 0x87d   :  { %v1005_v24 = vmul.f32 %v1003_v23, %v971_v52 }
 0x87f   :  { %v1010_v25 = vmul.f32 %v2023_v10, %v1005_v24 }
 0x881   :  { %v1015_v26 = vadd.f32 %v2024_v13, %v1010_v25 }
 0x883   :  { %1942 = vmatmul.msk.f32.gmra.mxu1 %vm99_vm0, %v1015_v26 }
 0x8f1   :  { %v1042_v27 = vpop.f32.mrf.mxu1 }
 0x8f2   :  { %v2575_v28 = vadd.f32 %v2025_v6, %v1042_v27 }
 0x8f4   :  { %1182 = vrot.lane.b32.xlu1 %v2575_v28, %s2155_s18  ;;  %1051 = vrot.lane.b32.xlu2 %v2575_v28, %s2154_s30  ;;  %v1048_v32 = vmul.f32 0.35355338, %v2575_v28 }
 0x8fc   :  { %1258 = vrot.lane.b32.xlu1 %v2575_v28, %s2161_s22 }
 0x900   :  { %v1045_v29 = vpop.f32.mrf.mxu1 }
 0x901   :  { %v2583_v61 = vadd.f32 %v2025_v6, %v1045_v29 }
 0x903   :  { %1079 = vrot.lane.b32.xlu0 %v2583_v61, %s2154_s30  ;;  %v2000_v30 = vpack.i.bf16 %v2575_v28, %v2583_v61  ;;  %v2590_v31 = vmul.f32 0.35355338, %v2583_v61  ;;  %s2865_s30 = smov 72  }
 0x905   :  { %2001 = vrot.lane.b32.xlu2 %v2000_v30, %s2162_s23  ;;  %1338 = vrot.lane.b32.xlu1 %v2590_v31, %s2157_s19  ;;  %s2870_s23 = smov 16  }
 0x90b   :  { %1180 = vrot.lane.b32.xlu0 %v1048_v32, %s2156_s11 }
 0x90d   :  { %1208 = vrot.lane.b32.xlu2 %v2590_v31, %s2156_s11  ;;  %s2867_s11 = smov 40  }
 0x913   :  { %1210 = vrot.lane.b32.xlu0 %v2583_v61, %s2155_s18  ;;  %s2866_s18 = smov 104  }
 0x91b   :  { %1340 = vrot.lane.b32.xlu0 %v2583_v61, %s2864_s5 }
 0x94e   :  { %v1052_v33 = vpop.permute.xlu2 %1051 }
 0x94f   :  { %1943 = vmatpush.xpose.msk.msra.mxu2 %vm198_vm8, %v1052_v33 }
 0x952   :  { %1944 = vmatmul.msk.f32.vlgmr.msra.gmra.mxu2 %vm198_vm8, %v1048_v32 }
 0x95f   :  { %v2002_v34 = vpop.permute.xlu2 %2001 }
 0x960   :  { %v2004_v35 = vunpack.i.h.bf16 %v2002_v34  ;;  %v2003_v36 = vunpack.i.l.bf16 %v2002_v34 }
 0x962   :  { %1149 = vmatpush.msra.mxu1 %v2004_v35  ;;  %1175 = vmatpush.msrb.mxu2 %v2003_v36  ;;  %v2010_v35 = vpack.i.bf16 %v2583_v61, %v2575_v28 }
 0x966   :  { %v1183_v37 = vpop.permute.xlu1 %1182 }
 0x967   :  { %v1209_v54 = vpop.permute.xlu2 %1208 }
 0x96e   :  { %v1259_v38 = vpop.permute.xlu1 %1258 }
 0x96f   :  { %1279 = vmatpush.msra.mxu2 %v1259_v38 }
 0x975   :  { %v1080_v39 = vpop.permute.xlu0 %1079 }
 0x976   :  { %1945 = vmatpush.xpose.msk.msrb.mxu0 %vm198_vm8, %v1080_v39 }
 0x977   :  { %v1339_v49 = vpop.permute.xlu1 %1338 }
 0x979   :  { %1946 = vmatmul.msk.f32.vlgmr.msrb.gmra.mxu0 %vm198_vm8, %v2590_v31 }
 0x97a   :  { %1949 = vmatpush.xpose.msk.msra.mxu0 %vm198_vm8, %v1183_v37 }
 0x97d   :  { %v1181_v40 = vpop.permute.xlu0 %1180 }
 0x981   :  { %1950 = vmatmul.msk.f32.vlgmr.msra.gmra.mxu0 %vm198_vm8, %v1181_v40 }
 0x985   :  { %v1211_v42 = vpop.permute.xlu0 %1210 }
 0x986   :  { %1951 = vmatpush.xpose.msk.msrb.mxu1 %vm198_vm8, %v1211_v42 }
 0x98d   :  { %v1341_v55 = vpop.permute.xlu0 %1340 }
 0x9d5   :  { %v1075_v43 = vpop.f32.mrf.mxu2 }
 0x9d6   :  { %v1106_v45 = vsel %vm198_vm8, %v1075_v43, -inf }
 0x9d7   :  { %1107 = vmax.xlane.f32.xlu1 %v1106_v45 }
 0x9f0   :  { %1470 = vrot.lane.b32.xlu1 %v2583_v61, %s2865_s30 }
 0x9f6   :  { %v1103_v46 = vpop.f32.mrf.mxu0 }
 0x9f7   :  { %v1109_v47 = vsel %vm198_vm8, %v1103_v46, -inf }
 0x9f8   :  { %1110 = vmax.xlane.f32.xlu2 %v1109_v47 }
 0x9fe   :  { %v1205_v48 = vpop.f32.mrf.mxu0 }
 0x9ff   :  { %v1236_v59 = vsel %vm198_vm8, %v1205_v48, -inf }
 0xa00   :  { %1237 = vmax.xlane.f32.xlu0 %v1236_v59 }
 0xa10   :  { %1312 = vrot.lane.b32.xlu2 %v2575_v28, %s2864_s5 }
 0xa14   :  { %1310 = vrot.lane.b32.xlu0 %v1048_v32, %s2157_s19  ;;  %s2868_s19 = smov 48  }
 0xa4a   :  { %v1108_v50 = vpop.xlane.xlu1 %1107 }
 0xa4b   :  { %v1112_v51 = vsub.f32 %v1075_v43, %v1108_v50 }
 0xa4d   :  { %v1114_v52 = vmul.f32 1.442695, %v1112_v51 }
 0xa4f   :  { %2083 = vpow2.f32 %v1114_v52 }
 0xa55   :  { %v2084_v18 = vpop.eup %2083 }
 0xa56   :  { %v1118_v53 = vsel %vm198_vm8, %v2084_v18, 0.0 }
 0xa57   :  { %1119 = vadd.xlane.f32.xlu1 %v1118_v53 }
 0xa62   :  { %v1471_v5 = vpop.permute.xlu1 %1470 }
 0xa6b   :  { %v1111_v56 = vpop.xlane.xlu2 %1110 }
 0xa6c   :  { %v1113_v57 = vsub.f32 %v1103_v46, %v1111_v56 }
 0xa6e   :  { %v1116_v58 = vmul.f32 1.442695, %v1113_v57 }
 0xa70   :  { %2085 = vpow2.f32 %v1116_v58  ;;  %1440 = vrot.lane.b32.xlu1 %v1048_v32, %s2866_s18 }
 0xa73   :  { %v1238_v60 = vpop.xlane.xlu0 %1237  ;;  %v1313_v10 = vpop.permute.xlu2 %1312 }
 0xa74   :  { %v1242_v62 = vsub.f32 %v1205_v48, %v1238_v60 }
 0xa76   :  { %v2086_v63 = vpop.eup %2085  ;;  %v1244_v0 = vmul.f32 1.442695, %v1242_v62 }
 0xa77   :  { %v1121_v1 = vsel %vm198_vm8, %v2086_v63, 0.0 }
 0xa78   :  { %2087 = vpow2.f32 %v1244_v0  ;;  %1122 = vadd.xlane.f32.xlu2 %v1121_v1 }
 0xa7e   :  { %v2088_v2 = vpop.eup %2087 }
 0xa7f   :  { %v1248_v4 = vsel %vm198_vm8, %v2088_v2, 0.0 }
 0xa80   :  { %1249 = vadd.xlane.f32.xlu0 %v1248_v4 }
 0xa86   :  { %v1311_v11 = vpop.permute.xlu0 %1310 }
 0xa90   :  { %1468 = vrot.lane.b32.xlu2 %v2590_v31, %s2866_s18 }
 0xa94   :  { %1442 = vrot.lane.b32.xlu0 %v2575_v28, %s2865_s30 }
 0xaca   :  { %v1120_v7 = vpop.xlane.xlu1 %1119 }
 0xacb   :  { %2089 = vrcp.f32 %v1120_v7 }
 0xad1   :  { %v2090_v8 = vpop.eup %2089 }
 0xad2   :  { %v1126_v9 = vmul.f32 %v2090_v8, %v2084_v18 }
 0xad4   :  { %1947 = vmatmul.msk.f32.vlgmr.msra.gmra.mxu1 %vm198_vm8, %v1126_v9 }
 0xad5   :  { %1955 = vmatpush.xpose.msk.msra.mxu1 %vm198_vm8, %v1313_v10 }
 0xadc   :  { %1952 = vmatmul.msk.f32.vlgmr.msrb.gmra.mxu1 %vm198_vm8, %v1209_v54 }
 0xae2   :  { %v1441_v21 = vpop.permute.xlu1 %1440 }
 0xae4   :  { %1956 = vmatmul.msk.f32.vlgmr.msra.gmra.mxu1 %vm198_vm8, %v1311_v11 }
 0xaeb   :  { %v1123_v12 = vpop.xlane.xlu2 %1122 }
 0xaec   :  { %2091 = vrcp.f32 %v1123_v12 }
 0xaf2   :  { %v2092_v13 = vpop.eup %2091 }
 0xaf3   :  { %v1127_v15 = vmul.f32 %v2092_v13, %v2086_v63  ;;  %v1250_v16 = vpop.xlane.xlu0 %1249  ;;  %v1469_v22 = vpop.permute.xlu2 %1468 }
 0xaf4   :  { %2093 = vrcp.f32 %v1250_v16 }
 0xaf5   :  { %1948 = vmatmul.msk.f32.vlgmr.msrb.gmra.mxu2 %vm198_vm8, %v1127_v15 }
 0xaf6   :  { %1957 = vmatpush.xpose.msk.msrb.mxu2 %vm198_vm8, %v1341_v55 }
 0xafa   :  { %v2094_v17 = vpop.eup %2093 }
 0xafb   :  { %v1256_v19 = vmul.f32 %v2094_v17, %v2088_v2 }
 0xafd   :  { %1953 = vmatmul.msk.f32.vlgmr.msra.gmra.mxu2 %vm198_vm8, %v1256_v19 }
 0xafe   :  { %1963 = vmatpush.xpose.msk.msra.mxu2 %vm198_vm8, %v1471_v5 }
 0xb05   :  { %1958 = vmatmul.msk.f32.vlgmr.msrb.gmra.mxu2 %vm198_vm8, %v1339_v49 }
 0xb06   :  { %v1443_v20 = vpop.permute.xlu0 %1442 }
 0xb07   :  { %1961 = vmatpush.xpose.msk.msrb.mxu1 %vm198_vm8, %v1443_v20 }
 0xb0a   :  { %1962 = vmatmul.msk.f32.vlgmr.msrb.gmra.mxu1 %vm198_vm8, %v1441_v21 }
 0xb0d   :  { %1964 = vmatmul.msk.f32.vlgmr.msra.gmra.mxu2 %vm198_vm8, %v1469_v22 }
 0xb51   :  { %v2639_v3 = vpop.f32.mrf.mxu1 }
 0xb59   :  { %v1233_v23 = vpop.f32.mrf.mxu1 }
 0xb5a   :  { %v1239_v24 = vsel %vm198_vm8, %v1233_v23, -inf }
 0xb5b   :  { %1240 = vmax.xlane.f32.xlu2 %v1239_v24 }
 0xb61   :  { %v1335_v25 = vpop.f32.mrf.mxu1 }
 0xb62   :  { %v1366_v26 = vsel %vm198_vm8, %v1335_v25, -inf }
 0xb63   :  { %1367 = vmax.xlane.f32.xlu0 %v1366_v26 }
 0xb78   :  { %v2643_v6 = vpop.f32.mrf.mxu2 }
 0xb80   :  { %v1281_v27 = vpop.f32.mrf.mxu2 }
 0xb87   :  { %v1465_v29 = vpop.f32.mrf.mxu1 }
 0xb88   :  { %v1363_v30 = vpop.f32.mrf.mxu2  ;;  %v1496_v31 = vsel %vm198_vm8, %v1465_v29, -inf }
 0xb89   :  { %1497 = vmax.xlane.f32.xlu2 %v1496_v31  ;;  %v1369_v32 = vsel %vm198_vm8, %v1363_v30, -inf  ;;  %v1913_v31 = vld [vmem:[%s2829_s6 + $0x28] sm:$0xff] }
 0xb8a   :  { %1370 = vmax.xlane.f32.xlu1 %v1369_v32  ;;  %v1912_v32 = vld [vmem:[%s2829_s6 + $0x20] sm:$0xff] }
 0xb90   :  { %v1493_v33 = vpop.f32.mrf.mxu2 }
 0xb91   :  { %v1499_v34 = vsel %vm198_vm8, %v1493_v33, -inf }
 0xb92   :  { %1500 = vmax.xlane.f32.xlu0 %v1499_v34 }
 0xba6   :  { %1284 = vrot.lane.b32.xlu0 %v2583_v61, %s2161_s22  ;;  %s2869_s22 = smov 8  }
 0xbae   :  { %2011 = vrot.lane.b32.xlu0 %v2010_v35, %s2867_s11 }
 0xbce   :  { %v1241_v36 = vpop.xlane.xlu2 %1240 }
 0xbcf   :  { %v1243_v37 = vsub.f32 %v1233_v23, %v1241_v36 }
 0xbd1   :  { %v1246_v38 = vmul.f32 1.442695, %v1243_v37 }
 0xbd3   :  { %2095 = vpow2.f32 %v1246_v38 }
 0xbd6   :  { %v1368_v39 = vpop.xlane.xlu0 %1367 }
 0xbd7   :  { %v1372_v40 = vsub.f32 %v1335_v25, %v1368_v39 }
 0xbd9   :  { %v2096_v42 = vpop.eup %2095  ;;  %v1374_v43 = vmul.f32 1.442695, %v1372_v40 }
 0xbda   :  { %v1251_v45 = vsel %vm198_vm8, %v2096_v42, 0.0 }
 0xbdb   :  { %2097 = vpow2.f32 %v1374_v43  ;;  %1252 = vadd.xlane.f32.xlu1 %v1251_v45 }
 0xbe1   :  { %v2098_v46 = vpop.eup %2097 }
 0xbe2   :  { %v1378_v47 = vsel %vm198_vm8, %v2098_v46, 0.0 }
 0xbe3   :  { %1379 = vadd.xlane.f32.xlu2 %v1378_v47 }
 0xbfc   :  { %v1498_v48 = vpop.xlane.xlu2 %1497 }
 0xbfd   :  { %v1502_v28 = vsub.f32 %v1465_v29, %v1498_v48  ;;  %v1371_v61 = vpop.xlane.xlu1 %1370  ;;  %v1915_v29 = vld [vmem:[%s2829_s6 + $0x38] sm:$0xff] }
 0xbfe   :  { %v1373_v59 = vsub.f32 %v1363_v30, %v1371_v61  ;;  %v1914_v30 = vld [vmem:[%s2829_s6 + $0x30] sm:$0xff]  ;;  %1621 = vmatpush.msra.mxu1 %v1915_v29 }
 0xbff   :  { %v1504_v49 = vmul.f32 1.442695, %v1502_v28 }
 0xc00   :  { %v1376_v50 = vmul.f32 1.442695, %v1373_v59  ;;  %1622 = vmatpush.msra.mxu1 %v1914_v30 }
 0xc01   :  { %2099 = vpow2.f32 %v1504_v49 }
 0xc02   :  { %2101 = vpow2.f32 %v1376_v50  ;;  %1623 = vmatpush.msra.mxu1 %v1913_v31 }
 0xc04   :  { %1624 = vmatpush.msra.mxu1 %v1912_v32 }
 0xc05   :  { %v1501_v51 = vpop.xlane.xlu0 %1500 }
 0xc06   :  { %v1503_v52 = vsub.f32 %v1493_v33, %v1501_v51 }
 0xc07   :  { %v2100_v18 = vpop.eup %2099 }
 0xc08   :  { %v2102_v53 = vpop.eup %2101  ;;  %v1506_v54 = vmul.f32 1.442695, %v1503_v52  ;;  %v1508_v55 = vsel %vm198_vm8, %v2100_v18, 0.0 }
 0xc09   :  { %1509 = vadd.xlane.f32.xlu2 %v1508_v55  ;;  %v1381_v56 = vsel %vm198_vm8, %v2102_v53, 0.0 }
 0xc0a   :  { %2103 = vpow2.f32 %v1506_v54  ;;  %1382 = vadd.xlane.f32.xlu1 %v1381_v56 }
 0xc10   :  { %v2104_v57 = vpop.eup %2103 }
 0xc11   :  { %v1511_v58 = vsel %vm198_vm8, %v2104_v57, 0.0 }
 0xc12   :  { %1512 = vadd.xlane.f32.xlu2 %v1511_v58  ;;  %v1922_v58 = vld [vmem:[%s2833_s10 + $0x38] sm:$0xff] }
 0xc13   :  { %1709 = vmatpush.msrb.mxu2 %v1922_v58 }
 0xc18   :  { %v1285_v60 = vpop.permute.xlu0 %1284 }
 0xc19   :  { %1305 = vmatpush.msrb.mxu0 %v1285_v60  ;;  %v1921_v60 = vld [vmem:[%s2833_s10 + $0x30] sm:$0xff] }
 0xc1a   :  { %1710 = vmatpush.msrb.mxu2 %v1921_v60 }
 0xc20   :  { %v2012_v9 = vpop.permute.xlu0 %2011 }
 0xc21   :  { %v2014_v16 = vunpack.i.h.bf16 %v2012_v9  ;;  %v2013_v17 = vunpack.i.l.bf16 %v2012_v9 }
 0xc23   :  { %2006 = vrot.lane.b32.xlu1 %v2010_v35, %s2868_s19 }
 0xc2a   :  { %1572 = vrot.lane.b32.xlu2 %v1281_v27, %s2869_s22 }
 0xc4e   :  { %v1253_v62 = vpop.xlane.xlu1 %1252 }
 0xc4f   :  { %2105 = vrcp.f32 %v1253_v62  ;;  %v1920_v62 = vld [vmem:[%s2833_s10 + $0x28] sm:$0xff] }
 0xc50   :  { %1711 = vmatpush.msrb.mxu2 %v1920_v62 }
 0xc55   :  { %v2106_v63 = vpop.eup %2105 }
 0xc56   :  { %v1257_v0 = vmul.f32 %v2106_v63, %v2096_v42  ;;  %v1380_v1 = vpop.xlane.xlu2 %1379  ;;  %v1919_v63 = vld [vmem:[%s2833_s10 + $0x20] sm:$0xff] }
 0xc57   :  { %2107 = vrcp.f32 %v1380_v1  ;;  %1712 = vmatpush.msrb.mxu2 %v1919_v63 }
 0xc58   :  { %1954 = vmatmul.msk.f32.vlgmr.msrb.gmra.mxu0 %vm198_vm8, %v1257_v0 }
 0xc5d   :  { %v2108_v5 = vpop.eup %2107 }
 0xc5e   :  { %v1386_v13 = vmul.f32 %v2108_v5, %v2098_v46  ;;  %v1938_v5 = vld [vmem:[%s2835_s12 + $0xf0] sm:$0xff] }
 0xc7c   :  { %v1510_v2 = vpop.xlane.xlu2 %1509 }
 0xc7d   :  { %v1383_v4 = vpop.xlane.xlu1 %1382 }
 0xc7e   :  { %2109 = vrcp.f32 %v1383_v4  ;;  %v1939_v4 = vld [vmem:[%s2835_s12 + $0xf8] sm:$0xff] }
 0xc7f   :  { %2111 = vrcp.f32 %v1510_v2 }
 0xc84   :  { %v2110_v8 = vpop.eup %2109 }
 0xc85   :  { %v1513_v7 = vpop.xlane.xlu2 %1512  ;;  %v1387_v15 = vmul.f32 %v2110_v8, %v2102_v53  ;;  %v2112_v19 = vpop.eup %2111 }
 0xc86   :  { %2113 = vrcp.f32 %v1513_v7  ;;  %v1516_v21 = vmul.f32 %v2112_v19, %v2100_v18  ;;  %v1937_v7 = vld [vmem:[%s2835_s12 + $0xe8] sm:$0xff] }
 0xc8c   :  { %v2114_v20 = vpop.eup %2113 }
 0xc8d   :  { %v1517_v22 = vmul.f32 %v2114_v20, %v2104_v57  ;;  %v1573_v34 = vpop.permute.xlu2 %1572  ;;  %v2027_v20 = vld [vmem:[%s2831_s8 + $0x1] ss:$0 sm:$0xff] }
 0xc8e   :  { %v1594_v35 = vsel %vm198_vm8, %v2639_v3, %v1573_v34  ;;  %v2026_v3 = vld [vmem:[%s2830_s7 + $0x1] ss:$0 sm:$0xff] }
 0xc95   :  { %v2007_v10 = vpop.permute.xlu1 %2006 }
 0xc96   :  { %v2009_v11 = vunpack.i.h.bf16 %v2007_v10  ;;  %v2008_v12 = vunpack.i.l.bf16 %v2007_v10 }
 0xc98   :  { %1409 = vmatpush.msra.mxu0 %v2008_v12  ;;  %1435 = vmatpush.msra.mxu3 %v2009_v11 }
 0xc99   :  { %1959 = vmatmul.msk.f32.vlgmr.msra.gmra.mxu0 %vm198_vm8, %v1386_v13  ;;  %1960 = vmatmul.msk.f32.vlgmr.msra.gmra.mxu3 %vm198_vm8, %v1387_v15 }
 0xc9a   :  { %1539 = vmatpush.msrb.mxu0 %v2013_v17  ;;  %1565 = vmatpush.msrb.mxu3 %v2014_v16 }
 0xc9c   :  { %1741 = vmatpush.msra.mxu0 %v1939_v4 }
 0xc9e   :  { %1742 = vmatpush.msra.mxu0 %v1938_v5 }
 0xca0   :  { %1743 = vmatpush.msra.mxu0 %v1937_v7 }
 0xca1   :  { %1965 = vmatmul.msk.f32.vlgmr.msrb.gmra.mxu0 %vm198_vm8, %v1516_v21  ;;  %1966 = vmatmul.msk.f32.vlgmr.msrb.gmra.mxu3 %vm198_vm8, %v1517_v22 }
 0xcd5   :  { %v1307_v23 = vpop.f32.mrf.mxu0 }
 0xcd6   :  { %1574 = vrot.lane.b32.xlu1 %v1307_v23, %s2869_s22 }
 0xd16   :  { %v1411_v24 = vpop.f32.mrf.mxu0 }
 0xd17   :  { %1580 = vrot.lane.b32.xlu0 %v1411_v24, %s2870_s23 }
 0xd1c   :  { %v1437_v25 = vpop.f32.mrf.mxu3 }
 0xd1e   :  { %v1541_v26 = vpop.f32.mrf.mxu0 }
 0xd1f   :  { %1588 = vrot.lane.b32.xlu0 %v1541_v26, %s2871_s0 }
 0xd24   :  { %v1567_v27 = vpop.f32.mrf.mxu3 }
 0xd25   :  { %1590 = vrot.lane.b32.xlu2 %v1567_v27, %s2871_s0 }
 0xd27   :  { %1582 = vrot.lane.b32.xlu0 %v1437_v25, %s2870_s23  ;;  %v2028_v25 = vld [vmem:[%s2832_s9 + $0x1] ss:$0 sm:$0xff] }
 0xd48   :  { %v1575_v39 = vpop.permute.xlu1 %1574 }
 0xd49   :  { %v1595_v40 = vsel %vm198_vm8, %v2643_v6, %v1575_v39  ;;  %v1933_v39 = vld [vmem:[%s2835_s12 + $0xc8] sm:$0xff] }
 0xd7f   :  { %v1591_v43 = vpop.permute.xlu2 %1590 }
 0xd89   :  { %v1581_v33 = vpop.permute.xlu0 %1580 }
 0xd8a   :  { %v1596_v36 = vsel %vm742_vm9, %v1594_v35, %v1581_v33 }
 0xd91   :  { %v1589_v37 = vpop.permute.xlu0 %1588 }
 0xd92   :  { %v1598_v38 = vsel %vm745_vm10, %v1596_v36, %v1589_v37  ;;  %v1936_v36 = vld [vmem:[%s2835_s12 + $0xe0] sm:$0xff]  ;;  %v1935_v37 = vld [vmem:[%s2835_s12 + $0xd8] sm:$0xff] }
 0xd93   :  { %1967 = vmatmul.msk.f32.vlgmr.msra.gmra.mxu1 %vm99_vm0, %v1598_v38  ;;  %1744 = vmatpush.msra.mxu0 %v1936_v36  ;;  %v1934_v38 = vld [vmem:[%s2835_s12 + $0xd0] sm:$0xff] }
 0xd95   :  { %1745 = vmatpush.msra.mxu0 %v1935_v37 }
 0xd97   :  { %1746 = vmatpush.msra.mxu0 %v1934_v38 }
 0xd99   :  { %v1583_v42 = vpop.permute.xlu0 %1582  ;;  %1747 = vmatpush.msra.mxu0 %v1933_v39 }
 0xd9a   :  { %v1597_v45 = vsel %vm742_vm9, %v1595_v40, %v1583_v42  ;;  %v1932_v40 = vld [vmem:[%s2835_s12 + $0xc0] sm:$0xff]  ;;  %v1931_v42 = vld [vmem:[%s2835_s12 + $0xb8] sm:$0xff] }
 0xd9b   :  { %v1599_v46 = vsel %vm745_vm10, %v1597_v45, %v1591_v43  ;;  %1748 = vmatpush.msra.mxu0 %v1932_v40  ;;  %v1930_v43 = vld [vmem:[%s2835_s12 + $0xb0] sm:$0xff]  ;;  %v1929_v45 = vld [vmem:[%s2835_s12 + $0xa8] sm:$0xff] }
 0xd9c   :  { %1968 = vmatmul.msk.f32.gmra.mxu1 %vm99_vm0, %v1599_v46  ;;  %v1928_v46 = vld [vmem:[%s2835_s12 + $0xa0] sm:$0xff] }
 0xd9d   :  { %1749 = vmatpush.msra.mxu0 %v1931_v42 }
 0xd9f   :  { %1750 = vmatpush.msra.mxu0 %v1930_v43 }
 0xda1   :  { %1751 = vmatpush.msra.mxu0 %v1929_v45 }
 0xda3   :  { %1752 = vmatpush.msra.mxu0 %v1928_v46 }
 0xe10   :  { %v1626_v47 = vpop.f32.mrf.mxu1 }
 0xe11   :  { %v1627_v48 = vadd.f32 %v2026_v3, %v1626_v47  ;;  %v1926_v47 = vld [vmem:[%s2835_s12 + $0x90] sm:$0xff] }
 0xe13   :  { %v2696_v28 = vadd.f32 %v1627_v48, %v2535_v41  ;;  %v1925_v48 = vld [vmem:[%s2835_s12 + $0x88] sm:$0xff] }
 0xe15   :  { %v1634_v6 = vsel %vm99_vm0, %v2696_v28, 0.0 }
 0xe16   :  { %1635 = vadd.xlane.f32.xlu1 %v1634_v6  ;;  %v1924_v6 = vld [vmem:[%s2835_s12 + $0x80] sm:$0xff] }
 0xe19   :  { %v1629_v61 = vpop.f32.mrf.mxu1 }
 0xe1a   :  { %v1630_v59 = vadd.f32 %v2026_v3, %v1629_v61  ;;  %v1927_v3 = vld [vmem:[%s2835_s12 + $0x98] sm:$0xff]  ;;  %v2029_v61 = vld [vmem:[%s2863_s27 + $0x1] ss:$0 sm:$0xff] }
 0xe1b   :  { %1753 = vmatpush.msra.mxu0 %v1927_v3  ;;  %v2031_v3 = vld [vmem:[%s2837_s14] ss:$0 sm:$0xff]  ;;  %s2168_s14 = smov [#allocation2]  }
 0xe1c   :  { %v2701_v49 = vadd.f32 %v1630_v59, %v2540_v44 }
 0xe1d   :  { %1754 = vmatpush.msra.mxu0 %v1926_v47 }
 0xe1e   :  { %v1637_v50 = vsel %vm99_vm0, %v2701_v49, 0.0 }
 0xe1f   :  { %1638 = vadd.xlane.f32.xlu0 %v1637_v50  ;;  %1755 = vmatpush.msra.mxu0 %v1925_v48 }
 0xe21   :  { %1756 = vmatpush.msra.mxu0 %v1924_v6 }
 0xe89   :  { %v1636_v51 = vpop.xlane.xlu1 %1635 }
 0xe8a   :  { %v1640_v52 = vmul.f32 %v1636_v51, %v2280_v14 }
 0xe8c   :  { %v1642_v18 = vsub.f32 %v2696_v28, %v1640_v52 }
 0xe8e   :  { %v1644_v41 = vmul.f32 %v1642_v18, %v1642_v18 }
 0xe90   :  { %v1646_v53 = vsel %vm99_vm0, %v1644_v41, 0.0 }
 0xe91   :  { %1647 = vadd.xlane.f32.xlu2 %v1646_v53 }
 0xe92   :  { %v1639_v54 = vpop.xlane.xlu0 %1638 }
 0xe93   :  { %v1641_v55 = vmul.f32 %v1639_v54, %v2280_v14 }
 0xe95   :  { %v1643_v56 = vsub.f32 %v2701_v49, %v1641_v55 }
 0xe97   :  { %v1645_v44 = vmul.f32 %v1643_v56, %v1643_v56 }
 0xe99   :  { %v1649_v57 = vsel %vm99_vm0, %v1645_v44, 0.0 }
 0xe9a   :  { %1650 = vadd.xlane.f32.xlu1 %v1649_v57 }
 0xf04   :  { %v1648_v0 = vpop.xlane.xlu2 %1647 }
 0xf05   :  { %v1652_v1 = vmul.f32 %v1648_v0, %v2280_v14 }
 0xf07   :  { %v1654_v2 = vadd.f32 1e-05, %v1652_v1 }
 0xf09   :  { %2115 = vrsqrt.f32 %v1654_v2  ;;  %vm1662_vm9 = vweird.f32 %v1654_v2 }
 0xf0d   :  { %v1651_v8 = vpop.xlane.xlu1 %1650 }
 0xf0e   :  { %v1653_v9 = vmul.f32 %v1651_v8, %v2280_v14  ;;  %v2030_v8 = vld [vmem:[%s2836_s13 + $0x1] ss:$0 sm:$0xff] }
 0xf0f   :  { %v2116_v10 = vpop.eup %2115 }
 0xf10   :  { %v1657_v11 = vmul.f32 %v2116_v10, %v1654_v2  ;;  %v1655_v12 = vadd.f32 1e-05, %v1653_v9  ;;  %vm1663_vm8 = vweird.f32 %v2116_v10 }
 0xf11   :  { %vm1664_vm10 = vmor %vm1662_vm9, %vm1663_vm8 }
 0xf12   :  { %v1658_v13 = vmul.f32 %v2116_v10, %v1657_v11  ;;  %2117 = vrsqrt.f32 %v1655_v12  ;;  %vm1672_vm12 = vweird.f32 %v1655_v12 }
 0xf14   :  { %v1659_v15 = vmul.f32 0.5, %v1658_v13 }
 0xf16   :  { %v1660_v16 = vsub.f32 1.5, %v1659_v15 }
 0xf18   :  { %v2118_v17 = vpop.eup %2117  ;;  %v1661_v19 = vmul.f32 %v2116_v10, %v1660_v16 }
 0xf19   :  { %v1667_v21 = vmul.f32 %v2118_v17, %v1655_v12  ;;  %vm1673_vm11 = vweird.f32 %v2118_v17 }
 0xf1a   :  { %v1665_v22 = vsel %vm1664_vm10, %v2116_v10, %v1661_v19  ;;  %vm1674_vm13 = vmor %vm1672_vm12, %vm1673_vm11 }
 0xf1b   :  { %v1676_v23 = vmul.f32 %v1665_v22, %v1642_v18  ;;  %v1668_v24 = vmul.f32 %v2118_v17, %v1667_v21 }
 0xf1d   :  { %v1681_v26 = vmul.f32 %v2027_v20, %v1676_v23  ;;  %v1669_v27 = vmul.f32 0.5, %v1668_v24 }
 0xf1f   :  { %v1670_v29 = vsub.f32 1.5, %v1669_v27  ;;  %v1686_v30 = vadd.f32 %v2028_v25, %v1681_v26 }
 0xf21   :  { %v1671_v31 = vmul.f32 %v2118_v17, %v1670_v29  ;;  %1969 = vmatmul.msk.f32.vlgmr.msrb.gmra.mxu2 %vm99_vm0, %v1686_v30  ;;  %v1824_v29 = vld [vmem:[%s2839_s16 + $0x10] sm:$0xff]  ;;  %v1823_v30 = vld [vmem:[%s2839_s16 + $0x8] sm:$0xff] }
 0xf23   :  { %v1675_v32 = vsel %vm1674_vm13, %v2118_v17, %v1671_v31  ;;  %v1822_v31 = vld [vmem:[%s2839_s16] sm:$0xff] }
 0xf24   :  { %v1677_v33 = vmul.f32 %v1675_v32, %v1643_v56 }
 0xf26   :  { %v1682_v34 = vmul.f32 %v2027_v20, %v1677_v33 }
 0xf28   :  { %v1687_v35 = vadd.f32 %v2028_v25, %v1682_v34 }
 0xf2a   :  { %1970 = vmatmul.msk.f32.gmra.mxu2 %vm99_vm0, %v1687_v35 }
 0xfa4   :  { %v1714_v59 = vpop.f32.mrf.mxu2 }
 0xfa5   :  { %v1715_v50 = vadd.f32 %v2029_v61, %v1714_v59 }
 0xfa7   :  { %v1720_v51 = vmul.f32 %v1715_v50, %v1715_v50 }
 0xfa9   :  { %v1722_v52 = vmul.f32 %v1720_v51, %v1715_v50 }
 0xfab   :  { %v1724_v18 = vmul.f32 0.044715, %v1722_v52 }
 0xfad   :  { %v1726_v41 = vadd.f32 %v1724_v18, %v1715_v50  ;;  %v1717_v53 = vpop.f32.mrf.mxu2 }
 0xfae   :  { %v1718_v54 = vadd.f32 %v2029_v61, %v1717_v53  ;;  %v2032_v61 = vld [vmem:[%s2838_s15] ss:$0 sm:$0xff]  ;;  %s1861_s15 = sshll.u32 %s2168_s14, 4  ;;  %s1862_s15 = int_to_ptr.vmem [resolvable:$true] %s1861_s15 }
 0xfaf   :  { %v1728_v55 = vmul.f32 0.7978846, %v1726_v41 }
 0xfb0   :  { %v1721_v56 = vmul.f32 %v1718_v54, %v1718_v54 }
 0xfb1   :  { %2119 = vtanh.f32 %v1728_v55 }
 0xfb2   :  { %v1723_v44 = vmul.f32 %v1721_v56, %v1718_v54 }
 0xfb4   :  { %v1725_v57 = vmul.f32 0.044715, %v1723_v44 }
 0xfb6   :  { %v1727_v58 = vadd.f32 %v1725_v57, %v1718_v54 }
 0xfb7   :  { %v2120_v60 = vpop.eup %2119 }
 0xfb8   :  { %v1732_v62 = vadd.f32 1.0, %v2120_v60  ;;  %v1729_v63 = vmul.f32 0.7978846, %v1727_v58 }
 0xfba   :  { %v1734_v0 = vmul.f32 0.5, %v1732_v62  ;;  %2121 = vtanh.f32 %v1729_v63 }
 0xfbc   :  { %v1736_v1 = vmul.f32 %v1734_v0, %v1715_v50 }
 0xfbe   :  { %1757 = vmatmul.f32.vlgmr.msra.gmra.mxu0 %v1736_v1 }
 0xfc0   :  { %v2122_v2 = vpop.eup %2121 }
 0xfc1   :  { %v1733_v4 = vadd.f32 1.0, %v2122_v2 }
 0xfc3   :  { %v1735_v5 = vmul.f32 0.5, %v1733_v4 }
 0xfc5   :  { %v1737_v7 = vmul.f32 %v1735_v5, %v1718_v54 }
 0xfc7   :  { %1760 = vmatmul.f32.gmra.mxu0 %v1737_v7 }
0x103b   :  { %v1758_v9 = vpop.f32.mrf.mxu0 }
0x103c   :  { %v1759_v10 = vadd.f32 %v2030_v8, %v1758_v9 }
0x103e   :  { %v1764_v11 = vadd.f32 %v1759_v10, %v2696_v28 }
0x1040   :  { %v1768_v12 = vsel %vm99_vm0, %v1764_v11, 0.0 }
0x1041   :  { %1769 = vadd.xlane.f32.xlu2 %v1768_v12 }
0x1044   :  { %v1761_v13 = vpop.f32.mrf.mxu0 }
0x1045   :  { %v1762_v15 = vadd.f32 %v2030_v8, %v1761_v13 }
0x1047   :  { %v1765_v16 = vadd.f32 %v1762_v15, %v2701_v49  ;;  %v1825_v49 = vld [vmem:[%s2839_s16 + $0x18] sm:$0xff] }
0x1048   :  { %1844 = vmatpush.msra.mxu3 %v1825_v49 }
0x1049   :  { %v1771_v17 = vsel %vm99_vm0, %v1765_v16, 0.0 }
0x104a   :  { %1772 = vadd.xlane.f32.xlu0 %v1771_v17  ;;  %1845 = vmatpush.msra.mxu3 %v1824_v29 }
0x104c   :  { %1846 = vmatpush.msra.mxu3 %v1823_v30 }
0x104e   :  { %1847 = vmatpush.msra.mxu3 %v1822_v31 }
0x10b4   :  { %v1770_v19 = vpop.xlane.xlu2 %1769 }
0x10b5   :  { %v1774_v20 = vmul.f32 %v1770_v19, %v2280_v14 }
0x10b7   :  { %v1776_v21 = vsub.f32 %v1764_v11, %v1774_v20 }
0x10b9   :  { %v1778_v22 = vmul.f32 %v1776_v21, %v1776_v21 }
0x10bb   :  { %v1780_v23 = vsel %vm99_vm0, %v1778_v22, 0.0 }
0x10bc   :  { %1781 = vadd.xlane.f32.xlu1 %v1780_v23 }
0x10bd   :  { %v1773_v24 = vpop.xlane.xlu0 %1772 }
0x10be   :  { %v1775_v28 = vmul.f32 %v1773_v24, %v2280_v14 }
0x10c0   :  { %v1777_v25 = vsub.f32 %v1765_v16, %v1775_v28 }
0x10c2   :  { %v1779_v26 = vmul.f32 %v1777_v25, %v1777_v25 }
0x10c4   :  { %v1783_v27 = vsel %vm99_vm0, %v1779_v26, 0.0 }
0x10c5   :  { %1784 = vadd.xlane.f32.xlu2 %v1783_v27 }
0x112f   :  { %v1782_v32 = vpop.xlane.xlu1 %1781 }
0x1130   :  { %v1786_v33 = vmul.f32 %v1782_v32, %v2280_v14 }
0x1132   :  { %v1788_v34 = vadd.f32 1e-05, %v1786_v33 }
0x1134   :  { %2123 = vrsqrt.f32 %v1788_v34  ;;  %vm1796_vm15 = vweird.f32 %v1788_v34 }
0x1138   :  { %v1785_v35 = vpop.xlane.xlu2 %1784 }
0x1139   :  { %v1787_v36 = vmul.f32 %v1785_v35, %v2280_v14 }
0x113a   :  { %v2124_v37 = vpop.eup %2123 }
0x113b   :  { %v1791_v38 = vmul.f32 %v2124_v37, %v1788_v34  ;;  %v1789_v39 = vadd.f32 1e-05, %v1787_v36  ;;  %vm1797_vm14 = vweird.f32 %v2124_v37 }
0x113c   :  { %vm1798_vm1 = vmor %vm1796_vm15, %vm1797_vm14 }
0x113d   :  { %v1792_v40 = vmul.f32 %v2124_v37, %v1791_v38  ;;  %2125 = vrsqrt.f32 %v1789_v39  ;;  %vm1806_vm3 = vweird.f32 %v1789_v39 }
0x113f   :  { %v1793_v42 = vmul.f32 0.5, %v1792_v40 }
0x1141   :  { %v1794_v43 = vsub.f32 1.5, %v1793_v42 }
0x1143   :  { %v2126_v45 = vpop.eup %2125  ;;  %v1795_v46 = vmul.f32 %v2124_v37, %v1794_v43 }
0x1144   :  { %v1801_v47 = vmul.f32 %v2126_v45, %v1789_v39  ;;  %vm1807_vm2 = vweird.f32 %v2126_v45 }
0x1145   :  { %v1799_v48 = vsel %vm1798_vm1, %v2124_v37, %v1795_v46  ;;  %vm1808_vm4 = vmor %vm1806_vm3, %vm1807_vm2 }
0x1146   :  { %v1810_v6 = vmul.f32 %v1799_v48, %v1776_v21  ;;  %v1802_v14 = vmul.f32 %v2126_v45, %v1801_v47 }
0x1148   :  { %v1815_v59 = vmul.f32 %v2031_v3, %v1810_v6  ;;  %v1803_v50 = vmul.f32 0.5, %v1802_v14 }
0x114a   :  { %v1804_v51 = vsub.f32 1.5, %v1803_v50  ;;  %v1820_v52 = vadd.f32 %v2032_v61, %v1815_v59 }
0x114c   :  { %v1805_v18 = vmul.f32 %v2126_v45, %v1804_v51  ;;  %1971 = vmatmul.msk.f32.vlgmr.msra.gmra.mxu3 %vm99_vm0, %v1820_v52 }
0x114e   :  { %v1809_v41 = vsel %vm1808_vm4, %v2126_v45, %v1805_v18 }
0x114f   :  { %v1811_v53 = vmul.f32 %v1809_v41, %v1777_v25 }
0x1151   :  { %v1816_v54 = vmul.f32 %v2031_v3, %v1811_v53 }
0x1153   :  { %v1821_v55 = vadd.f32 %v2032_v61, %v1816_v54 }
0x1155   :  { %1972 = vmatmul.msk.f32.gmra.mxu3 %vm99_vm0, %v1821_v55 }
0x11cf   :  { %v1849_v56 = vpop.f32.mrf.mxu3 }
0x11d0   :  { %1855 = vst.msk [vmem:[#allocation2] sm:$0xff] %vm99_vm0, %v1849_v56 }
0x11d8   :  { %v1852_v44 = vpop.f32.mrf.mxu3 }
0x11d9   :  { %1856 = vst.msk [vmem:[#allocation2 + $0x8] sm:$0xff] %vm99_vm0, %v1852_v44 }
0x11da   :  { %1869 = dma.vmem_to_hbm [thread:$0]  %s1862_s15, 256, %s1864_s21, [#allocation3], %s2169_s24, %s2169_s24, %s2869_s22  }
0x11db   :  { %2151 = dma.done.wait [#allocation3], 256  }
0x11dc   :  { %2152 = vsyncadd [#allocation3], 4294967040 }
0x11dd   :  { %1874 = vsyncpa [#allocation3], 1 }

</bundles_post_ra>
